<compile_context>
chip_gen: v6e
topology: v6e:2x2x1
jax: 0.10.0
libtpu: 0.0.40
codegen_flags: <defaults>
</compile_context>

<pallas_src>
import functools

import jax
import jax.numpy as jnp
import numpy as np
from jax.experimental import pallas as pl
from jax.experimental.pallas import tpu as pltpu

MHU = 1.5
# A = [[mhu, -mhu], [1/mhu, 0]] -- fixed constants from the module.
A_MAT = ((MHU, -MHU), (1.0 / MHU, 0.0))


def _lstm_kernel(x_ref, tau_ref, z0_ref, cz0_ref,
                 w_ref, bw_ref, axw_ref, axb_ref,
                 out_ref, zfin_ref, czfin_ref,
                 h_s, c_s, x_s,
                 *, hidden_size, state_dim, chunk, seq_len):
    H = hidden_size
    SD = state_dim
    ci = pl.program_id(0)

    # Initialize carried state from the initial hidden state on the first chunk.
    @pl.when(ci == 0)
    def _init():
        x_s[...] = z0_ref[0, :, :SD]
        h_s[...] = z0_ref[0, :, SD:]
        c_s[...] = cz0_ref[0, :, SD:]

    # Grid-invariant operands, loaded once per chunk (hoisted out of the loop).
    w_fused = w_ref[...]      # (SD+Din+H, 4H+SD) bf16: [Wx|Win|U] cols (gates [i,f,o,g]) + A^T cols
    b_fused = bw_ref[...]     # (1, 4H+SD) f32 (zeros for the A^T columns)
    axw = axw_ref[...]        # (H, 2*SD)  bf16: [alpha_gate^T | W_h_to_x^T]
    axb = axb_ref[...]        # (1, 2*SD)  f32

    t_base = ci * chunk

    def step(tt, carry):
        x_prev, h, c = carry                       # (B,SD), (B,H), (B,H) f32
        inp = x_ref[tt]                            # (B, Din)
        tau_t = tau_ref[tt]                        # (B, 1)

        # ---- single fused MXU call: all gates and x_prev @ A^T ----
        u_full = jnp.concatenate([x_prev, inp, h], axis=-1).astype(jnp.bfloat16)
        g_full = jnp.dot(u_full, w_fused,
                         preferred_element_type=jnp.float32) + b_fused

        sig = jax.nn.sigmoid(g_full[:, :3 * H])    # one EUP dispatch for i, f, o
        i_g = sig[:, 0:H]
        f_g = sig[:, H:2 * H]
        o_g = sig[:, 2 * H:3 * H]
        g_g = jnp.tanh(g_full[:, 3 * H:4 * H])
        x_a = g_full[:, 4 * H:]                    # (B, SD) == x_prev @ A^T

        c_new = f_g * c + i_g * g_g
        h_new = o_g * jnp.tanh(c_new)

        # ---- forward-Euler discretisation + sigmoid-gated convex x update ----
        x_mid = x_prev + tau_t * x_a
        ax = jnp.dot(h_new.astype(jnp.bfloat16), axw,
                     preferred_element_type=jnp.float32) + axb
        alpha = jax.nn.sigmoid(ax[:, :SD])
        hx = ax[:, SD:]
        x_next = (1.0 - alpha) * x_mid + alpha * hx

        # outputs[:, t, :] = cat(x_next, h_new); the HBM DMA of the whole
        # (TT, B, Z) block happens once per chunk.
        out_ref[tt] = jnp.concatenate([x_next, h_new],
                                      axis=-1).astype(out_ref.dtype)

        # Freeze the carried state on padded timesteps (tail of the last chunk).
        valid = ((t_base + tt) < seq_len).astype(jnp.float32)
        x_next = valid * x_next + (1.0 - valid) * x_prev
        h_next = valid * h_new + (1.0 - valid) * h
        c_next = valid * c_new + (1.0 - valid) * c
        return x_next, h_next, c_next

    x_f, h_f, c_f = jax.lax.fori_loop(
        0, chunk, step, (x_s[...], h_s[...], c_s[...]),
        unroll=(chunk <= 16))

    # Carry state across chunks in VMEM scratch.
    x_s[...] = x_f
    h_s[...] = h_f
    c_s[...] = c_f

    @pl.when(ci == pl.num_programs(0) - 1)
    def _finalize():
        zfin_ref[0] = jnp.concatenate([x_f, h_f], axis=-1).astype(zfin_ref.dtype)
        czfin_ref[0] = jnp.concatenate([cz0_ref[0, :, :SD], c_f],
                                       axis=-1).astype(czfin_ref.dtype)


def lstm_forward(x, tau, z0, cz0, params, *, state_dim, time_chunk=128):
    """x:(B,T,Din), tau:(B,T,1), z0/cz0:(1,B,Z). Returns (outputs (B,T,Z), (z, c_z))."""
    B, T, Din = x.shape
    L, _, Z = z0.shape
    assert L == 1, "kernel implements num_layers == 1"
    H = Z - state_dim
    SD = state_dim

    TT = max(1, min(time_chunk, T))
    num_chunks = pl.cdiv(T, TT)
    T_pad = num_chunks * TT

    x_t = jnp.transpose(x, (1, 0, 2)).astype(jnp.float32)      # (T, B, Din)
    tau_t = jnp.transpose(tau, (1, 0, 2)).astype(jnp.float32)  # (T, B, 1)
    if T_pad != T:
        pad = ((0, T_pad - T), (0, 0), (0, 0))
        x_t = jnp.pad(x_t, pad)
        tau_t = jnp.pad(tau_t, pad)

    # ---- fuse & reorder weights host-side ----
    # Reorder gate rows [i, f, g, o] -> [i, f, o, g] so one sigmoid covers
    # columns [:3H] and one tanh covers [3H:4H].
    W = params["W_weight"]                            # (4H, SD + Din)
    U = params["U_weight"]                            # (4H, H)
    bW = params["W_bias"]                             # (4H,)
    perm = np.concatenate([np.arange(0, H), np.arange(H, 2 * H),
                           np.arange(3 * H, 4 * H), np.arange(2 * H, 3 * H)])
    W_r, U_r, b_r = W[perm], U[perm], bW[perm]

    A = jnp.array(A_MAT, jnp.float32)                 # (SD, SD)
    gate_rhs = jnp.concatenate([W_r[:, :SD].T, W_r[:, SD:].T, U_r.T],
                               axis=0)                # (SD+Din+H, 4H)
    a_rhs = jnp.zeros((SD + Din + H, SD), jnp.float32).at[:SD, :].set(A.T)
    w_fused = jnp.concatenate([gate_rhs, a_rhs],
                              axis=1).astype(jnp.bfloat16)   # (SD+Din+H, 4H+SD)
    b_fused = jnp.concatenate([b_r, jnp.zeros((SD,), jnp.float32)]
                              ).reshape(1, 4 * H + SD)

    axw = jnp.concatenate([params["alpha_weight"].T, params["Whx_weight"].T],
                          axis=1).astype(jnp.bfloat16)       # (H, 2*SD)
    axb = jnp.concatenate([params["alpha_bias"], params["Whx_bias"]]
                          ).reshape(1, 2 * SD)

    kernel = functools.partial(_lstm_kernel, hidden_size=H, state_dim=SD,
                               chunk=TT, seq_len=T)

    grid_spec = pltpu.PrefetchScalarGridSpec(
        num_scalar_prefetch=0,
        grid=(num_chunks,),
        in_specs=[
            pl.BlockSpec((TT, B, Din), lambda c: (c, 0, 0)),          # x chunks
            pl.BlockSpec((TT, B, 1), lambda c: (c, 0, 0)),            # tau chunks
            pl.BlockSpec((1, B, Z), lambda c: (0, 0, 0)),             # z0
            pl.BlockSpec((1, B, Z), lambda c: (0, 0, 0)),             # c_z0
            pl.BlockSpec((SD + Din + H, 4 * H + SD), lambda c: (0, 0)),  # fused W|U|A^T
            pl.BlockSpec((1, 4 * H + SD), lambda c: (0, 0)),             # fused bias
            pl.BlockSpec((H, 2 * SD), lambda c: (0, 0)),                 # alpha|Whx weights
            pl.BlockSpec((1, 2 * SD), lambda c: (0, 0)),                 # alpha|Whx bias
        ],
        out_specs=[
            pl.BlockSpec((TT, B, Z), lambda c: (c, 0, 0)),            # outputs chunks
            pl.BlockSpec((1, B, Z), lambda c: (0, 0, 0)),             # final z
            pl.BlockSpec((1, B, Z), lambda c: (0, 0, 0)),             # final c_z
        ],
        scratch_shapes=[
            pltpu.VMEM((B, H), jnp.float32),    # h carry across chunks
            pltpu.VMEM((B, H), jnp.float32),    # c carry across chunks
            pltpu.VMEM((B, SD), jnp.float32),   # x carry across chunks
        ],
    )

    out_t, z_fin, cz_fin = pl.pallas_call(
        kernel,
        grid_spec=grid_spec,
        out_shape=(
            jax.ShapeDtypeStruct((T_pad, B, Z), jnp.float32),
            jax.ShapeDtypeStruct((1, B, Z), jnp.float32),
            jax.ShapeDtypeStruct((1, B, Z), jnp.float32),
        ),
        compiler_params=pltpu.CompilerParams(
            dimension_semantics=("arbitrary",)),   # time recurrence is sequential
    )(x_t, tau_t, z0.astype(jnp.float32), cz0.astype(jnp.float32),
      w_fused, b_fused, axw, axb)

    outputs = jnp.transpose(out_t[:T], (1, 0, 2))   # back to (B, T, Z)
    return outputs, (z_fin, cz_fin)


def lstm_reference(x, tau, z0, cz0, params, *, state_dim):
    """Pure-JAX reference mirroring the PyTorch forward loop (num_layers=1).

    Matmul operands are quantized to bf16 (f32 accumulation), matching the TPU
    MXU input precision used by the kernel, so the comparison isolates kernel
    logic (fusion / reordering / chunking) rather than MXU rounding.
    """
    B, T, Din = x.shape
    Z = z0.shape[-1]
    H = Z - state_dim
    SD = state_dim
    A = jnp.array(A_MAT, jnp.float32)

    def bdot(a, b):
        return jnp.dot(a.astype(jnp.bfloat16), b.astype(jnp.bfloat16),
                       preferred_element_type=jnp.float32)

    W, bW = params["W_weight"], params["W_bias"]
    U = params["U_weight"]
    aw, ab = params["alpha_weight"], params["alpha_bias"]
    hw, hb = params["Whx_weight"], params["Whx_bias"]

    x_state = z0[0, :, :SD]
    h = z0[0, :, SD:]
    c = cz0[0, :, SD:]
    c_x = cz0[0, :, :SD]

    outs = []
    for t in range(T):
        u_t = jnp.concatenate([x_state, x[:, t, :]], axis=1)
        gates = bdot(u_t, W.T) + bW + bdot(h, U.T)
        i_g = jax.nn.sigmoid(gates[:, 0:H])
        f_g = jax.nn.sigmoid(gates[:, H:2 * H])
        g_g = jnp.tanh(gates[:, 2 * H:3 * H])
        o_g = jax.nn.sigmoid(gates[:, 3 * H:4 * H])
        c = f_g * c + i_g * g_g
        h = o_g * jnp.tanh(c)
        x_mid = x_state + tau[:, t, :] * bdot(x_state, A.T)
        alpha = jax.nn.sigmoid(bdot(h, aw.T) + ab)
        hx = bdot(h, hw.T) + hb
        x_state = (1.0 - alpha) * x_mid + alpha * hx
        outs.append(jnp.concatenate([x_state, h], axis=-1))

    outputs = jnp.stack(outs, axis=1)
    z = jnp.concatenate([x_state, h], axis=-1)[None]
    c_z = jnp.concatenate([c_x, c], axis=-1)[None]
    return outputs, (z, c_z)


def init_params(key, input_size, hidden_size, state_dim):
    """Deterministic param init (PyTorch Linear-style uniform)."""
    ks = jax.random.split(key, 7)
    H, SD, Din = hidden_size, state_dim, input_size

    def uni(k, shape, fan_in):
        bound = 1.0 / np.sqrt(fan_in)
        return jax.random.uniform(k, shape, jnp.float32, -bound, bound)

    return {
        "W_weight": uni(ks[0], (4 * H, SD + Din), SD + Din),
        "W_bias": uni(ks[1], (4 * H,), SD + Din),
        "U_weight": uni(ks[2], (4 * H, H), H),
        "alpha_weight": uni(ks[3], (SD, H), H),
        "alpha_bias": uni(ks[4], (SD,), H),
        "Whx_weight": uni(ks[5], (SD, H), H),
        "Whx_bias": uni(ks[6], (SD,), H),
    }


if __name__ == "__main__":
    B, T = 4, 12
    input_size = 8
    state_dim = 2            # A is 2x2 -> state_dim must be 2
    hidden_size = 32
    z_size = hidden_size + state_dim   # 34

    key = jax.random.PRNGKey(0)
    k_x, k_tau, k_z, k_cz, k_p = jax.random.split(key, 5)

    x = jax.random.normal(k_x, (B, T, input_size), jnp.float32)
    tau = 0.1 * jax.random.uniform(k_tau, (B, T, 1), jnp.float32)
    z0 = 0.1 * jax.random.normal(k_z, (1, B, z_size), jnp.float32)
    cz0 = 0.1 * jax.random.normal(k_cz, (1, B, z_size), jnp.float32)
    params = init_params(k_p, input_size, hidden_size, state_dim)

    ref_out, (ref_z, ref_cz) = lstm_reference(x, tau, z0, cz0, params,
                                              state_dim=state_dim)

    # time_chunk=8 exercises multi-chunk carry + tail masking (T=12 -> 2 chunks);
    # time_chunk=128 exercises the default single-chunk path.
    for tc in (8, 128):
        outputs, (z_fin, cz_fin) = lstm_forward(x, tau, z0, cz0, params,
                                                state_dim=state_dim,
                                                time_chunk=tc)
        jax.block_until_ready((outputs, z_fin, cz_fin))
        np.testing.assert_allclose(np.asarray(outputs), np.asarray(ref_out),
                                   rtol=1e-3, atol=1e-3)
        np.testing.assert_allclose(np.asarray(z_fin), np.asarray(ref_z),
                                   rtol=1e-3, atol=1e-3)
        np.testing.assert_allclose(np.asarray(cz_fin), np.asarray(ref_cz),
                                   rtol=1e-3, atol=1e-3)

    print("KERNEL_OK")
</pallas_src>

<mosaic_0001>
module attributes {stable_mosaic.version = 11 : i64} {
  func.func @_lstm_kernel(%arg0: i32, %arg1: memref<8x4x8xf32, #tpu.memory_space<vmem>>, %arg2: memref<8x4x1xf32, #tpu.memory_space<vmem>>, %arg3: memref<1x4x34xf32, #tpu.memory_space<vmem>>, %arg4: memref<1x4x34xf32, #tpu.memory_space<vmem>>, %arg5: memref<42x130xbf16, #tpu.memory_space<vmem>>, %arg6: memref<1x130xf32, #tpu.memory_space<vmem>>, %arg7: memref<32x4xbf16, #tpu.memory_space<vmem>>, %arg8: memref<1x4xf32, #tpu.memory_space<vmem>>, %arg9: memref<8x4x34xf32, #tpu.memory_space<vmem>>, %arg10: memref<1x4x34xf32, #tpu.memory_space<vmem>>, %arg11: memref<1x4x34xf32, #tpu.memory_space<vmem>>, %arg12: memref<4x32xf32, #tpu.memory_space<vmem>>, %arg13: memref<4x32xf32, #tpu.memory_space<vmem>>, %arg14: memref<4x2xf32, #tpu.memory_space<vmem>>) attributes {dimension_semantics = [#tpu.dimension_semantics<arbitrary>], iteration_bounds = array<i64: 2>, scalar_prefetch = 0 : i64, scratch_operands = 3 : i64, tpu.core_type = #tpu.core_type<tc>, window_params = [{transform_indices = @transform_0, window_bounds = array<i64: 8, 4, 8>}, {transform_indices = @transform_1, window_bounds = array<i64: 8, 4, 1>}, {pipeline_mode = #tpu.pipeline_mode<synchronous>, transform_indices = @transform_2, window_bounds = array<i64: 1, 4, 34>}, {pipeline_mode = #tpu.pipeline_mode<synchronous>, transform_indices = @transform_3, window_bounds = array<i64: 1, 4, 34>}, {pipeline_mode = #tpu.pipeline_mode<synchronous>, transform_indices = @transform_4, window_bounds = array<i64: 42, 130>}, {pipeline_mode = #tpu.pipeline_mode<synchronous>, transform_indices = @transform_5, window_bounds = array<i64: 1, 130>}, {pipeline_mode = #tpu.pipeline_mode<synchronous>, transform_indices = @transform_6, window_bounds = array<i64: 32, 4>}, {pipeline_mode = #tpu.pipeline_mode<synchronous>, transform_indices = @transform_7, window_bounds = array<i64: 1, 4>}, {transform_indices = @transform_8, window_bounds = array<i64: 8, 4, 34>}, {pipeline_mode = #tpu.pipeline_mode<synchronous>, transform_indices = @transform_9, window_bounds = array<i64: 1, 4, 34>}, {pipeline_mode = #tpu.pipeline_mode<synchronous>, transform_indices = @transform_10, window_bounds = array<i64: 1, 4, 34>}]} {
    %c0_i32 = arith.constant 0 : i32
    %0 = arith.cmpi eq, %arg0, %c0_i32 : i32
    %1 = arith.extui %0 : i1 to i32
    %c0_i32_0 = arith.constant 0 : i32
    %2 = arith.cmpi ne, %1, %c0_i32_0 : i32
    scf.if %2 {
      %c0_142 = arith.constant 0 : index
      %c0_143 = arith.constant 0 : index
      %c0_144 = arith.constant 0 : index
      %609 = vector.load %arg3[%c0_142, %c0_143, %c0_144] : memref<1x4x34xf32, #tpu.memory_space<vmem>>, vector<1x4x2xf32>
      %610 = vector.shape_cast %609 : vector<1x4x2xf32> to vector<4x2xf32>
      %c0_145 = arith.constant 0 : index
      %c0_146 = arith.constant 0 : index
      %611 = vector.load %arg14[%c0_145, %c0_146] : memref<4x2xf32, #tpu.memory_space<vmem>>, vector<4x2xf32>
      tpu.vector_store %arg14[%c0_145, %c0_146], %610 {strides = array<i32>} : memref<4x2xf32, #tpu.memory_space<vmem>>, vector<4x2xf32>,
      %c0_147 = arith.constant 0 : index
      %c0_148 = arith.constant 0 : index
      %c2 = arith.constant 2 : index
      %612 = vector.load %arg3[%c0_147, %c0_148, %c2] : memref<1x4x34xf32, #tpu.memory_space<vmem>>, vector<1x4x32xf32>
      %613 = vector.shape_cast %612 : vector<1x4x32xf32> to vector<4x32xf32>
      %c0_149 = arith.constant 0 : index
      %c0_150 = arith.constant 0 : index
      %614 = vector.load %arg12[%c0_149, %c0_150] : memref<4x32xf32, #tpu.memory_space<vmem>>, vector<4x32xf32>
      tpu.vector_store %arg12[%c0_149, %c0_150], %613 {strides = array<i32>} : memref<4x32xf32, #tpu.memory_space<vmem>>, vector<4x32xf32>,
      %c0_151 = arith.constant 0 : index
      %c0_152 = arith.constant 0 : index
      %c2_153 = arith.constant 2 : index
      %615 = vector.load %arg4[%c0_151, %c0_152, %c2_153] : memref<1x4x34xf32, #tpu.memory_space<vmem>>, vector<1x4x32xf32>
      %616 = vector.shape_cast %615 : vector<1x4x32xf32> to vector<4x32xf32>
      %c0_154 = arith.constant 0 : index
      %c0_155 = arith.constant 0 : index
      %617 = vector.load %arg13[%c0_154, %c0_155] : memref<4x32xf32, #tpu.memory_space<vmem>>, vector<4x32xf32>
      tpu.vector_store %arg13[%c0_154, %c0_155], %616 {strides = array<i32>} : memref<4x32xf32, #tpu.memory_space<vmem>>, vector<4x32xf32>,
    } else {
    }
    %c0 = arith.constant 0 : index
    %c0_1 = arith.constant 0 : index
    %3 = vector.load %arg5[%c0, %c0_1] : memref<42x130xbf16, #tpu.memory_space<vmem>>, vector<42x130xbf16>
    %c0_2 = arith.constant 0 : index
    %c0_3 = arith.constant 0 : index
    %4 = vector.load %arg6[%c0_2, %c0_3] : memref<1x130xf32, #tpu.memory_space<vmem>>, vector<1x130xf32>
    %c0_4 = arith.constant 0 : index
    %c0_5 = arith.constant 0 : index
    %5 = vector.load %arg7[%c0_4, %c0_5] : memref<32x4xbf16, #tpu.memory_space<vmem>>, vector<32x4xbf16>
    %c0_6 = arith.constant 0 : index
    %c0_7 = arith.constant 0 : index
    %6 = vector.load %arg8[%c0_6, %c0_7] : memref<1x4xf32, #tpu.memory_space<vmem>>, vector<1x4xf32>
    %c8_i32 = arith.constant 8 : i32
    %7 = arith.muli %arg0, %c8_i32 : i32
    %c0_8 = arith.constant 0 : index
    %c0_9 = arith.constant 0 : index
    %8 = vector.load %arg14[%c0_8, %c0_9] : memref<4x2xf32, #tpu.memory_space<vmem>>, vector<4x2xf32>
    %c0_10 = arith.constant 0 : index
    %c0_11 = arith.constant 0 : index
    %9 = vector.load %arg12[%c0_10, %c0_11] : memref<4x32xf32, #tpu.memory_space<vmem>>, vector<4x32xf32>
    %c0_12 = arith.constant 0 : index
    %c0_13 = arith.constant 0 : index
    %10 = vector.load %arg13[%c0_12, %c0_13] : memref<4x32xf32, #tpu.memory_space<vmem>>, vector<4x32xf32>
    %c0_i32_14 = arith.constant 0 : i32
    %11 = arith.index_cast %c0_i32_14 : i32 to index
    %c0_15 = arith.constant 0 : index
    %c0_16 = arith.constant 0 : index
    %12 = vector.load %arg1[%11, %c0_15, %c0_16] : memref<8x4x8xf32, #tpu.memory_space<vmem>>, vector<1x4x8xf32>
    %13 = vector.shape_cast %12 : vector<1x4x8xf32> to vector<4x8xf32>
    %14 = arith.index_cast %c0_i32_14 : i32 to index
    %c0_17 = arith.constant 0 : index
    %c0_18 = arith.constant 0 : index
    %15 = vector.load %arg2[%14, %c0_17, %c0_18] : memref<8x4x1xf32, #tpu.memory_space<vmem>>, vector<1x4x1xf32>
    %16 = vector.shape_cast %15 : vector<1x4x1xf32> to vector<4x1xf32>
    %17 = tpu.concatenate %8, %13, %9 in 1 : vector<4x2xf32>, vector<4x8xf32>, vector<4x32xf32> -> vector<4x42xf32>
    %18 = arith.truncf %17 : vector<4x42xf32> to vector<4x42xbf16>
    %cst = arith.constant dense<0.000000e+00> : vector<4x130xf32>
    %19 = tpu.matmul %18, %3, %cst {dimension_numbers = #tpu.dot_dimension_numbers<[1], [0], [0], [1], [0, 0, 1, 1], [], []>} : vector<4x42xbf16>, vector<42x130xbf16>, vector<4x130xf32> -> vector<4x130xf32>
    %20 = vector.broadcast %4 : vector<1x130xf32> to vector<4x130xf32>
    %21 = arith.addf %19, %20 : vector<4x130xf32>
    %22 = vector.extract_strided_slice %21 {offsets = [0, 0], sizes = [4, 96], strides = [1, 1]} : vector<4x130xf32> to vector<4x96xf32>
    %23 = arith.negf %22 : vector<4x96xf32>
    %24 = math.exp %23 : vector<4x96xf32>
    %cst_19 = arith.constant 1.000000e+00 : f32
    %25 = vector.broadcast %cst_19 : f32 to vector<4x96xf32>
    %26 = arith.addf %25, %24 : vector<4x96xf32>
    %27 = arith.divf %25, %26 : vector<4x96xf32>
    %28 = vector.extract_strided_slice %27 {offsets = [0, 0], sizes = [4, 32], strides = [1, 1]} : vector<4x96xf32> to vector<4x32xf32>
    %29 = vector.extract_strided_slice %27 {offsets = [0, 32], sizes = [4, 32], strides = [1, 1]} : vector<4x96xf32> to vector<4x32xf32>
    %30 = vector.extract_strided_slice %27 {offsets = [0, 64], sizes = [4, 32], strides = [1, 1]} : vector<4x96xf32> to vector<4x32xf32>
    %31 = vector.extract_strided_slice %21 {offsets = [0, 96], sizes = [4, 32], strides = [1, 1]} : vector<4x130xf32> to vector<4x32xf32>
    %32 = math.tanh %31 : vector<4x32xf32>
    %33 = vector.extract_strided_slice %21 {offsets = [0, 128], sizes = [4, 2], strides = [1, 1]} : vector<4x130xf32> to vector<4x2xf32>
    %34 = arith.mulf %29, %10 : vector<4x32xf32>
    %35 = arith.mulf %28, %32 : vector<4x32xf32>
    %36 = arith.addf %34, %35 : vector<4x32xf32>
    %37 = math.tanh %36 : vector<4x32xf32>
    %38 = arith.mulf %30, %37 : vector<4x32xf32>
    %39 = vector.broadcast %16 : vector<4x1xf32> to vector<4x2xf32>
    %40 = arith.mulf %39, %33 : vector<4x2xf32>
    %41 = arith.addf %8, %40 : vector<4x2xf32>
    %42 = arith.truncf %38 : vector<4x32xf32> to vector<4x32xbf16>
    %cst_20 = arith.constant dense<0.000000e+00> : vector<4x4xf32>
    %43 = tpu.matmul %42, %5, %cst_20 {dimension_numbers = #tpu.dot_dimension_numbers<[1], [0], [0], [1], [0, 0, 1, 1], [], []>} : vector<4x32xbf16>, vector<32x4xbf16>, vector<4x4xf32> -> vector<4x4xf32>
    %44 = vector.broadcast %6 : vector<1x4xf32> to vector<4x4xf32>
    %45 = arith.addf %43, %44 : vector<4x4xf32>
    %46 = vector.extract_strided_slice %45 {offsets = [0, 0], sizes = [4, 2], strides = [1, 1]} : vector<4x4xf32> to vector<4x2xf32>
    %47 = arith.negf %46 : vector<4x2xf32>
    %48 = math.exp %47 : vector<4x2xf32>
    %cst_21 = arith.constant 1.000000e+00 : f32
    %49 = vector.broadcast %cst_21 : f32 to vector<4x2xf32>
    %50 = arith.addf %49, %48 : vector<4x2xf32>
    %51 = arith.divf %49, %50 : vector<4x2xf32>
    %52 = vector.extract_strided_slice %45 {offsets = [0, 2], sizes = [4, 2], strides = [1, 1]} : vector<4x4xf32> to vector<4x2xf32>
    %cst_22 = arith.constant 1.000000e+00 : f32
    %53 = vector.broadcast %cst_22 : f32 to vector<4x2xf32>
    %54 = arith.subf %53, %51 : vector<4x2xf32>
    %55 = arith.mulf %54, %41 : vector<4x2xf32>
    %56 = arith.mulf %51, %52 : vector<4x2xf32>
    %57 = arith.addf %55, %56 : vector<4x2xf32>
    %58 = tpu.concatenate %57, %38 in 1 : vector<4x2xf32>, vector<4x32xf32> -> vector<4x34xf32>
    %59 = arith.index_cast %c0_i32_14 : i32 to index
    %c0_23 = arith.constant 0 : index
    %c0_24 = arith.constant 0 : index
    %60 = vector.load %arg9[%59, %c0_23, %c0_24] : memref<8x4x34xf32, #tpu.memory_space<vmem>>, vector<1x4x34xf32>
    %61 = vector.shape_cast %60 : vector<1x4x34xf32> to vector<4x34xf32>
    %62 = vector.shape_cast %58 : vector<4x34xf32> to vector<1x4x34xf32>
    tpu.vector_store %arg9[%59, %c0_23, %c0_24], %62 {strides = array<i32>} : memref<8x4x34xf32, #tpu.memory_space<vmem>>, vector<1x4x34xf32>,
    %63 = arith.addi %7, %c0_i32_14 : i32
    %c12_i32 = arith.constant 12 : i32
    %64 = arith.cmpi slt, %63, %c12_i32 : i32
    %65 = arith.extui %64 : i1 to i32
    %66 = arith.sitofp %65 : i32 to f32
    %67 = vector.broadcast %66 : f32 to vector<4x2xf32>
    %68 = arith.mulf %67, %57 : vector<4x2xf32>
    %cst_25 = arith.constant 1.000000e+00 : f32
    %69 = arith.subf %cst_25, %66 : f32
    %70 = vector.broadcast %69 : f32 to vector<4x2xf32>
    %71 = arith.mulf %70, %8 : vector<4x2xf32>
    %72 = arith.addf %68, %71 : vector<4x2xf32>
    %73 = vector.broadcast %66 : f32 to vector<4x32xf32>
    %74 = arith.mulf %73, %38 : vector<4x32xf32>
    %cst_26 = arith.constant 1.000000e+00 : f32
    %75 = arith.subf %cst_26, %66 : f32
    %76 = vector.broadcast %75 : f32 to vector<4x32xf32>
    %77 = arith.mulf %76, %9 : vector<4x32xf32>
    %78 = arith.addf %74, %77 : vector<4x32xf32>
    %79 = vector.broadcast %66 : f32 to vector<4x32xf32>
    %80 = arith.mulf %79, %36 : vector<4x32xf32>
    %cst_27 = arith.constant 1.000000e+00 : f32
    %81 = arith.subf %cst_27, %66 : f32
    %82 = vector.broadcast %81 : f32 to vector<4x32xf32>
    %83 = arith.mulf %82, %10 : vector<4x32xf32>
    %84 = arith.addf %80, %83 : vector<4x32xf32>
    %c1_i32 = arith.constant 1 : i32
    %85 = arith.index_cast %c1_i32 : i32 to index
    %c0_28 = arith.constant 0 : index
    %c0_29 = arith.constant 0 : index
    %86 = vector.load %arg1[%85, %c0_28, %c0_29] : memref<8x4x8xf32, #tpu.memory_space<vmem>>, vector<1x4x8xf32>
    %87 = vector.shape_cast %86 : vector<1x4x8xf32> to vector<4x8xf32>
    %88 = arith.index_cast %c1_i32 : i32 to index
    %c0_30 = arith.constant 0 : index
    %c0_31 = arith.constant 0 : index
    %89 = vector.load %arg2[%88, %c0_30, %c0_31] : memref<8x4x1xf32, #tpu.memory_space<vmem>>, vector<1x4x1xf32>
    %90 = vector.shape_cast %89 : vector<1x4x1xf32> to vector<4x1xf32>
    %91 = tpu.concatenate %72, %87, %78 in 1 : vector<4x2xf32>, vector<4x8xf32>, vector<4x32xf32> -> vector<4x42xf32>
    %92 = arith.truncf %91 : vector<4x42xf32> to vector<4x42xbf16>
    %cst_32 = arith.constant dense<0.000000e+00> : vector<4x130xf32>
    %93 = tpu.matmul %92, %3, %cst_32 {dimension_numbers = #tpu.dot_dimension_numbers<[1], [0], [0], [1], [0, 0, 1, 1], [], []>} : vector<4x42xbf16>, vector<42x130xbf16>, vector<4x130xf32> -> vector<4x130xf32>
    %94 = vector.broadcast %4 : vector<1x130xf32> to vector<4x130xf32>
    %95 = arith.addf %93, %94 : vector<4x130xf32>
    %96 = vector.extract_strided_slice %95 {offsets = [0, 0], sizes = [4, 96], strides = [1, 1]} : vector<4x130xf32> to vector<4x96xf32>
    %97 = arith.negf %96 : vector<4x96xf32>
    %98 = math.exp %97 : vector<4x96xf32>
    %cst_33 = arith.constant 1.000000e+00 : f32
    %99 = vector.broadcast %cst_33 : f32 to vector<4x96xf32>
    %100 = arith.addf %99, %98 : vector<4x96xf32>
    %101 = arith.divf %99, %100 : vector<4x96xf32>
    %102 = vector.extract_strided_slice %101 {offsets = [0, 0], sizes = [4, 32], strides = [1, 1]} : vector<4x96xf32> to vector<4x32xf32>
    %103 = vector.extract_strided_slice %101 {offsets = [0, 32], sizes = [4, 32], strides = [1, 1]} : vector<4x96xf32> to vector<4x32xf32>
    %104 = vector.extract_strided_slice %101 {offsets = [0, 64], sizes = [4, 32], strides = [1, 1]} : vector<4x96xf32> to vector<4x32xf32>
    %105 = vector.extract_strided_slice %95 {offsets = [0, 96], sizes = [4, 32], strides = [1, 1]} : vector<4x130xf32> to vector<4x32xf32>
    %106 = math.tanh %105 : vector<4x32xf32>
    %107 = vector.extract_strided_slice %95 {offsets = [0, 128], sizes = [4, 2], strides = [1, 1]} : vector<4x130xf32> to vector<4x2xf32>
    %108 = arith.mulf %103, %84 : vector<4x32xf32>
    %109 = arith.mulf %102, %106 : vector<4x32xf32>
    %110 = arith.addf %108, %109 : vector<4x32xf32>
    %111 = math.tanh %110 : vector<4x32xf32>
    %112 = arith.mulf %104, %111 : vector<4x32xf32>
    %113 = vector.broadcast %90 : vector<4x1xf32> to vector<4x2xf32>
    %114 = arith.mulf %113, %107 : vector<4x2xf32>
    %115 = arith.addf %72, %114 : vector<4x2xf32>
    %116 = arith.truncf %112 : vector<4x32xf32> to vector<4x32xbf16>
    %cst_34 = arith.constant dense<0.000000e+00> : vector<4x4xf32>
    %117 = tpu.matmul %116, %5, %cst_34 {dimension_numbers = #tpu.dot_dimension_numbers<[1], [0], [0], [1], [0, 0, 1, 1], [], []>} : vector<4x32xbf16>, vector<32x4xbf16>, vector<4x4xf32> -> vector<4x4xf32>
    %118 = vector.broadcast %6 : vector<1x4xf32> to vector<4x4xf32>
    %119 = arith.addf %117, %118 : vector<4x4xf32>
    %120 = vector.extract_strided_slice %119 {offsets = [0, 0], sizes = [4, 2], strides = [1, 1]} : vector<4x4xf32> to vector<4x2xf32>
    %121 = arith.negf %120 : vector<4x2xf32>
    %122 = math.exp %121 : vector<4x2xf32>
    %cst_35 = arith.constant 1.000000e+00 : f32
    %123 = vector.broadcast %cst_35 : f32 to vector<4x2xf32>
    %124 = arith.addf %123, %122 : vector<4x2xf32>
    %125 = arith.divf %123, %124 : vector<4x2xf32>
    %126 = vector.extract_strided_slice %119 {offsets = [0, 2], sizes = [4, 2], strides = [1, 1]} : vector<4x4xf32> to vector<4x2xf32>
    %cst_36 = arith.constant 1.000000e+00 : f32
    %127 = vector.broadcast %cst_36 : f32 to vector<4x2xf32>
    %128 = arith.subf %127, %125 : vector<4x2xf32>
    %129 = arith.mulf %128, %115 : vector<4x2xf32>
    %130 = arith.mulf %125, %126 : vector<4x2xf32>
    %131 = arith.addf %129, %130 : vector<4x2xf32>
    %132 = tpu.concatenate %131, %112 in 1 : vector<4x2xf32>, vector<4x32xf32> -> vector<4x34xf32>
    %133 = arith.index_cast %c1_i32 : i32 to index
    %c0_37 = arith.constant 0 : index
    %c0_38 = arith.constant 0 : index
    %134 = vector.load %arg9[%133, %c0_37, %c0_38] : memref<8x4x34xf32, #tpu.memory_space<vmem>>, vector<1x4x34xf32>
    %135 = vector.shape_cast %134 : vector<1x4x34xf32> to vector<4x34xf32>
    %136 = vector.shape_cast %132 : vector<4x34xf32> to vector<1x4x34xf32>
    tpu.vector_store %arg9[%133, %c0_37, %c0_38], %136 {strides = array<i32>} : memref<8x4x34xf32, #tpu.memory_space<vmem>>, vector<1x4x34xf32>,
    %137 = arith.addi %7, %c1_i32 : i32
    %c12_i32_39 = arith.constant 12 : i32
    %138 = arith.cmpi slt, %137, %c12_i32_39 : i32
    %139 = arith.extui %138 : i1 to i32
    %140 = arith.sitofp %139 : i32 to f32
    %141 = vector.broadcast %140 : f32 to vector<4x2xf32>
    %142 = arith.mulf %141, %131 : vector<4x2xf32>
    %cst_40 = arith.constant 1.000000e+00 : f32
    %143 = arith.subf %cst_40, %140 : f32
    %144 = vector.broadcast %143 : f32 to vector<4x2xf32>
    %145 = arith.mulf %144, %72 : vector<4x2xf32>
    %146 = arith.addf %142, %145 : vector<4x2xf32>
    %147 = vector.broadcast %140 : f32 to vector<4x32xf32>
    %148 = arith.mulf %147, %112 : vector<4x32xf32>
    %cst_41 = arith.constant 1.000000e+00 : f32
    %149 = arith.subf %cst_41, %140 : f32
    %150 = vector.broadcast %149 : f32 to vector<4x32xf32>
    %151 = arith.mulf %150, %78 : vector<4x32xf32>
    %152 = arith.addf %148, %151 : vector<4x32xf32>
    %153 = vector.broadcast %140 : f32 to vector<4x32xf32>
    %154 = arith.mulf %153, %110 : vector<4x32xf32>
    %cst_42 = arith.constant 1.000000e+00 : f32
    %155 = arith.subf %cst_42, %140 : f32
    %156 = vector.broadcast %155 : f32 to vector<4x32xf32>
    %157 = arith.mulf %156, %84 : vector<4x32xf32>
    %158 = arith.addf %154, %157 : vector<4x32xf32>
    %c2_i32 = arith.constant 2 : i32
    %159 = arith.index_cast %c2_i32 : i32 to index
    %c0_43 = arith.constant 0 : index
    %c0_44 = arith.constant 0 : index
    %160 = vector.load %arg1[%159, %c0_43, %c0_44] : memref<8x4x8xf32, #tpu.memory_space<vmem>>, vector<1x4x8xf32>
    %161 = vector.shape_cast %160 : vector<1x4x8xf32> to vector<4x8xf32>
    %162 = arith.index_cast %c2_i32 : i32 to index
    %c0_45 = arith.constant 0 : index
    %c0_46 = arith.constant 0 : index
    %163 = vector.load %arg2[%162, %c0_45, %c0_46] : memref<8x4x1xf32, #tpu.memory_space<vmem>>, vector<1x4x1xf32>
    %164 = vector.shape_cast %163 : vector<1x4x1xf32> to vector<4x1xf32>
    %165 = tpu.concatenate %146, %161, %152 in 1 : vector<4x2xf32>, vector<4x8xf32>, vector<4x32xf32> -> vector<4x42xf32>
    %166 = arith.truncf %165 : vector<4x42xf32> to vector<4x42xbf16>
    %cst_47 = arith.constant dense<0.000000e+00> : vector<4x130xf32>
    %167 = tpu.matmul %166, %3, %cst_47 {dimension_numbers = #tpu.dot_dimension_numbers<[1], [0], [0], [1], [0, 0, 1, 1], [], []>} : vector<4x42xbf16>, vector<42x130xbf16>, vector<4x130xf32> -> vector<4x130xf32>
    %168 = vector.broadcast %4 : vector<1x130xf32> to vector<4x130xf32>
    %169 = arith.addf %167, %168 : vector<4x130xf32>
    %170 = vector.extract_strided_slice %169 {offsets = [0, 0], sizes = [4, 96], strides = [1, 1]} : vector<4x130xf32> to vector<4x96xf32>
    %171 = arith.negf %170 : vector<4x96xf32>
    %172 = math.exp %171 : vector<4x96xf32>
    %cst_48 = arith.constant 1.000000e+00 : f32
    %173 = vector.broadcast %cst_48 : f32 to vector<4x96xf32>
    %174 = arith.addf %173, %172 : vector<4x96xf32>
    %175 = arith.divf %173, %174 : vector<4x96xf32>
    %176 = vector.extract_strided_slice %175 {offsets = [0, 0], sizes = [4, 32], strides = [1, 1]} : vector<4x96xf32> to vector<4x32xf32>
    %177 = vector.extract_strided_slice %175 {offsets = [0, 32], sizes = [4, 32], strides = [1, 1]} : vector<4x96xf32> to vector<4x32xf32>
    %178 = vector.extract_strided_slice %175 {offsets = [0, 64], sizes = [4, 32], strides = [1, 1]} : vector<4x96xf32> to vector<4x32xf32>
    %179 = vector.extract_strided_slice %169 {offsets = [0, 96], sizes = [4, 32], strides = [1, 1]} : vector<4x130xf32> to vector<4x32xf32>
    %180 = math.tanh %179 : vector<4x32xf32>
    %181 = vector.extract_strided_slice %169 {offsets = [0, 128], sizes = [4, 2], strides = [1, 1]} : vector<4x130xf32> to vector<4x2xf32>
    %182 = arith.mulf %177, %158 : vector<4x32xf32>
    %183 = arith.mulf %176, %180 : vector<4x32xf32>
    %184 = arith.addf %182, %183 : vector<4x32xf32>
    %185 = math.tanh %184 : vector<4x32xf32>
    %186 = arith.mulf %178, %185 : vector<4x32xf32>
    %187 = vector.broadcast %164 : vector<4x1xf32> to vector<4x2xf32>
    %188 = arith.mulf %187, %181 : vector<4x2xf32>
    %189 = arith.addf %146, %188 : vector<4x2xf32>
    %190 = arith.truncf %186 : vector<4x32xf32> to vector<4x32xbf16>
    %cst_49 = arith.constant dense<0.000000e+00> : vector<4x4xf32>
    %191 = tpu.matmul %190, %5, %cst_49 {dimension_numbers = #tpu.dot_dimension_numbers<[1], [0], [0], [1], [0, 0, 1, 1], [], []>} : vector<4x32xbf16>, vector<32x4xbf16>, vector<4x4xf32> -> vector<4x4xf32>
    %192 = vector.broadcast %6 : vector<1x4xf32> to vector<4x4xf32>
    %193 = arith.addf %191, %192 : vector<4x4xf32>
    %194 = vector.extract_strided_slice %193 {offsets = [0, 0], sizes = [4, 2], strides = [1, 1]} : vector<4x4xf32> to vector<4x2xf32>
    %195 = arith.negf %194 : vector<4x2xf32>
    %196 = math.exp %195 : vector<4x2xf32>
    %cst_50 = arith.constant 1.000000e+00 : f32
    %197 = vector.broadcast %cst_50 : f32 to vector<4x2xf32>
    %198 = arith.addf %197, %196 : vector<4x2xf32>
    %199 = arith.divf %197, %198 : vector<4x2xf32>
    %200 = vector.extract_strided_slice %193 {offsets = [0, 2], sizes = [4, 2], strides = [1, 1]} : vector<4x4xf32> to vector<4x2xf32>
    %cst_51 = arith.constant 1.000000e+00 : f32
    %201 = vector.broadcast %cst_51 : f32 to vector<4x2xf32>
    %202 = arith.subf %201, %199 : vector<4x2xf32>
    %203 = arith.mulf %202, %189 : vector<4x2xf32>
    %204 = arith.mulf %199, %200 : vector<4x2xf32>
    %205 = arith.addf %203, %204 : vector<4x2xf32>
    %206 = tpu.concatenate %205, %186 in 1 : vector<4x2xf32>, vector<4x32xf32> -> vector<4x34xf32>
    %207 = arith.index_cast %c2_i32 : i32 to index
    %c0_52 = arith.constant 0 : index
    %c0_53 = arith.constant 0 : index
    %208 = vector.load %arg9[%207, %c0_52, %c0_53] : memref<8x4x34xf32, #tpu.memory_space<vmem>>, vector<1x4x34xf32>
    %209 = vector.shape_cast %208 : vector<1x4x34xf32> to vector<4x34xf32>
    %210 = vector.shape_cast %206 : vector<4x34xf32> to vector<1x4x34xf32>
    tpu.vector_store %arg9[%207, %c0_52, %c0_53], %210 {strides = array<i32>} : memref<8x4x34xf32, #tpu.memory_space<vmem>>, vector<1x4x34xf32>,
    %211 = arith.addi %7, %c2_i32 : i32
    %c12_i32_54 = arith.constant 12 : i32
    %212 = arith.cmpi slt, %211, %c12_i32_54 : i32
    %213 = arith.extui %212 : i1 to i32
    %214 = arith.sitofp %213 : i32 to f32
    %215 = vector.broadcast %214 : f32 to vector<4x2xf32>
    %216 = arith.mulf %215, %205 : vector<4x2xf32>
    %cst_55 = arith.constant 1.000000e+00 : f32
    %217 = arith.subf %cst_55, %214 : f32
    %218 = vector.broadcast %217 : f32 to vector<4x2xf32>
    %219 = arith.mulf %218, %146 : vector<4x2xf32>
    %220 = arith.addf %216, %219 : vector<4x2xf32>
    %221 = vector.broadcast %214 : f32 to vector<4x32xf32>
    %222 = arith.mulf %221, %186 : vector<4x32xf32>
    %cst_56 = arith.constant 1.000000e+00 : f32
    %223 = arith.subf %cst_56, %214 : f32
    %224 = vector.broadcast %223 : f32 to vector<4x32xf32>
    %225 = arith.mulf %224, %152 : vector<4x32xf32>
    %226 = arith.addf %222, %225 : vector<4x32xf32>
    %227 = vector.broadcast %214 : f32 to vector<4x32xf32>
    %228 = arith.mulf %227, %184 : vector<4x32xf32>
    %cst_57 = arith.constant 1.000000e+00 : f32
    %229 = arith.subf %cst_57, %214 : f32
    %230 = vector.broadcast %229 : f32 to vector<4x32xf32>
    %231 = arith.mulf %230, %158 : vector<4x32xf32>
    %232 = arith.addf %228, %231 : vector<4x32xf32>
    %c3_i32 = arith.constant 3 : i32
    %233 = arith.index_cast %c3_i32 : i32 to index
    %c0_58 = arith.constant 0 : index
    %c0_59 = arith.constant 0 : index
    %234 = vector.load %arg1[%233, %c0_58, %c0_59] : memref<8x4x8xf32, #tpu.memory_space<vmem>>, vector<1x4x8xf32>
    %235 = vector.shape_cast %234 : vector<1x4x8xf32> to vector<4x8xf32>
    %236 = arith.index_cast %c3_i32 : i32 to index
    %c0_60 = arith.constant 0 : index
    %c0_61 = arith.constant 0 : index
    %237 = vector.load %arg2[%236, %c0_60, %c0_61] : memref<8x4x1xf32, #tpu.memory_space<vmem>>, vector<1x4x1xf32>
    %238 = vector.shape_cast %237 : vector<1x4x1xf32> to vector<4x1xf32>
    %239 = tpu.concatenate %220, %235, %226 in 1 : vector<4x2xf32>, vector<4x8xf32>, vector<4x32xf32> -> vector<4x42xf32>
    %240 = arith.truncf %239 : vector<4x42xf32> to vector<4x42xbf16>
    %cst_62 = arith.constant dense<0.000000e+00> : vector<4x130xf32>
    %241 = tpu.matmul %240, %3, %cst_62 {dimension_numbers = #tpu.dot_dimension_numbers<[1], [0], [0], [1], [0, 0, 1, 1], [], []>} : vector<4x42xbf16>, vector<42x130xbf16>, vector<4x130xf32> -> vector<4x130xf32>
    %242 = vector.broadcast %4 : vector<1x130xf32> to vector<4x130xf32>
    %243 = arith.addf %241, %242 : vector<4x130xf32>
    %244 = vector.extract_strided_slice %243 {offsets = [0, 0], sizes = [4, 96], strides = [1, 1]} : vector<4x130xf32> to vector<4x96xf32>
    %245 = arith.negf %244 : vector<4x96xf32>
    %246 = math.exp %245 : vector<4x96xf32>
    %cst_63 = arith.constant 1.000000e+00 : f32
    %247 = vector.broadcast %cst_63 : f32 to vector<4x96xf32>
    %248 = arith.addf %247, %246 : vector<4x96xf32>
    %249 = arith.divf %247, %248 : vector<4x96xf32>
    %250 = vector.extract_strided_slice %249 {offsets = [0, 0], sizes = [4, 32], strides = [1, 1]} : vector<4x96xf32> to vector<4x32xf32>
    %251 = vector.extract_strided_slice %249 {offsets = [0, 32], sizes = [4, 32], strides = [1, 1]} : vector<4x96xf32> to vector<4x32xf32>
    %252 = vector.extract_strided_slice %249 {offsets = [0, 64], sizes = [4, 32], strides = [1, 1]} : vector<4x96xf32> to vector<4x32xf32>
    %253 = vector.extract_strided_slice %243 {offsets = [0, 96], sizes = [4, 32], strides = [1, 1]} : vector<4x130xf32> to vector<4x32xf32>
    %254 = math.tanh %253 : vector<4x32xf32>
    %255 = vector.extract_strided_slice %243 {offsets = [0, 128], sizes = [4, 2], strides = [1, 1]} : vector<4x130xf32> to vector<4x2xf32>
    %256 = arith.mulf %251, %232 : vector<4x32xf32>
    %257 = arith.mulf %250, %254 : vector<4x32xf32>
    %258 = arith.addf %256, %257 : vector<4x32xf32>
    %259 = math.tanh %258 : vector<4x32xf32>
    %260 = arith.mulf %252, %259 : vector<4x32xf32>
    %261 = vector.broadcast %238 : vector<4x1xf32> to vector<4x2xf32>
    %262 = arith.mulf %261, %255 : vector<4x2xf32>
    %263 = arith.addf %220, %262 : vector<4x2xf32>
    %264 = arith.truncf %260 : vector<4x32xf32> to vector<4x32xbf16>
    %cst_64 = arith.constant dense<0.000000e+00> : vector<4x4xf32>
    %265 = tpu.matmul %264, %5, %cst_64 {dimension_numbers = #tpu.dot_dimension_numbers<[1], [0], [0], [1], [0, 0, 1, 1], [], []>} : vector<4x32xbf16>, vector<32x4xbf16>, vector<4x4xf32> -> vector<4x4xf32>
    %266 = vector.broadcast %6 : vector<1x4xf32> to vector<4x4xf32>
    %267 = arith.addf %265, %266 : vector<4x4xf32>
    %268 = vector.extract_strided_slice %267 {offsets = [0, 0], sizes = [4, 2], strides = [1, 1]} : vector<4x4xf32> to vector<4x2xf32>
    %269 = arith.negf %268 : vector<4x2xf32>
    %270 = math.exp %269 : vector<4x2xf32>
    %cst_65 = arith.constant 1.000000e+00 : f32
    %271 = vector.broadcast %cst_65 : f32 to vector<4x2xf32>
    %272 = arith.addf %271, %270 : vector<4x2xf32>
    %273 = arith.divf %271, %272 : vector<4x2xf32>
    %274 = vector.extract_strided_slice %267 {offsets = [0, 2], sizes = [4, 2], strides = [1, 1]} : vector<4x4xf32> to vector<4x2xf32>
    %cst_66 = arith.constant 1.000000e+00 : f32
    %275 = vector.broadcast %cst_66 : f32 to vector<4x2xf32>
    %276 = arith.subf %275, %273 : vector<4x2xf32>
    %277 = arith.mulf %276, %263 : vector<4x2xf32>
    %278 = arith.mulf %273, %274 : vector<4x2xf32>
    %279 = arith.addf %277, %278 : vector<4x2xf32>
    %280 = tpu.concatenate %279, %260 in 1 : vector<4x2xf32>, vector<4x32xf32> -> vector<4x34xf32>
    %281 = arith.index_cast %c3_i32 : i32 to index
    %c0_67 = arith.constant 0 : index
    %c0_68 = arith.constant 0 : index
    %282 = vector.load %arg9[%281, %c0_67, %c0_68] : memref<8x4x34xf32, #tpu.memory_space<vmem>>, vector<1x4x34xf32>
    %283 = vector.shape_cast %282 : vector<1x4x34xf32> to vector<4x34xf32>
    %284 = vector.shape_cast %280 : vector<4x34xf32> to vector<1x4x34xf32>
    tpu.vector_store %arg9[%281, %c0_67, %c0_68], %284 {strides = array<i32>} : memref<8x4x34xf32, #tpu.memory_space<vmem>>, vector<1x4x34xf32>,
    %285 = arith.addi %7, %c3_i32 : i32
    %c12_i32_69 = arith.constant 12 : i32
    %286 = arith.cmpi slt, %285, %c12_i32_69 : i32
    %287 = arith.extui %286 : i1 to i32
    %288 = arith.sitofp %287 : i32 to f32
    %289 = vector.broadcast %288 : f32 to vector<4x2xf32>
    %290 = arith.mulf %289, %279 : vector<4x2xf32>
    %cst_70 = arith.constant 1.000000e+00 : f32
    %291 = arith.subf %cst_70, %288 : f32
    %292 = vector.broadcast %291 : f32 to vector<4x2xf32>
    %293 = arith.mulf %292, %220 : vector<4x2xf32>
    %294 = arith.addf %290, %293 : vector<4x2xf32>
    %295 = vector.broadcast %288 : f32 to vector<4x32xf32>
    %296 = arith.mulf %295, %260 : vector<4x32xf32>
    %cst_71 = arith.constant 1.000000e+00 : f32
    %297 = arith.subf %cst_71, %288 : f32
    %298 = vector.broadcast %297 : f32 to vector<4x32xf32>
    %299 = arith.mulf %298, %226 : vector<4x32xf32>
    %300 = arith.addf %296, %299 : vector<4x32xf32>
    %301 = vector.broadcast %288 : f32 to vector<4x32xf32>
    %302 = arith.mulf %301, %258 : vector<4x32xf32>
    %cst_72 = arith.constant 1.000000e+00 : f32
    %303 = arith.subf %cst_72, %288 : f32
    %304 = vector.broadcast %303 : f32 to vector<4x32xf32>
    %305 = arith.mulf %304, %232 : vector<4x32xf32>
    %306 = arith.addf %302, %305 : vector<4x32xf32>
    %c4_i32 = arith.constant 4 : i32
    %307 = arith.index_cast %c4_i32 : i32 to index
    %c0_73 = arith.constant 0 : index
    %c0_74 = arith.constant 0 : index
    %308 = vector.load %arg1[%307, %c0_73, %c0_74] : memref<8x4x8xf32, #tpu.memory_space<vmem>>, vector<1x4x8xf32>
    %309 = vector.shape_cast %308 : vector<1x4x8xf32> to vector<4x8xf32>
    %310 = arith.index_cast %c4_i32 : i32 to index
    %c0_75 = arith.constant 0 : index
    %c0_76 = arith.constant 0 : index
    %311 = vector.load %arg2[%310, %c0_75, %c0_76] : memref<8x4x1xf32, #tpu.memory_space<vmem>>, vector<1x4x1xf32>
    %312 = vector.shape_cast %311 : vector<1x4x1xf32> to vector<4x1xf32>
    %313 = tpu.concatenate %294, %309, %300 in 1 : vector<4x2xf32>, vector<4x8xf32>, vector<4x32xf32> -> vector<4x42xf32>
    %314 = arith.truncf %313 : vector<4x42xf32> to vector<4x42xbf16>
    %cst_77 = arith.constant dense<0.000000e+00> : vector<4x130xf32>
    %315 = tpu.matmul %314, %3, %cst_77 {dimension_numbers = #tpu.dot_dimension_numbers<[1], [0], [0], [1], [0, 0, 1, 1], [], []>} : vector<4x42xbf16>, vector<42x130xbf16>, vector<4x130xf32> -> vector<4x130xf32>
    %316 = vector.broadcast %4 : vector<1x130xf32> to vector<4x130xf32>
    %317 = arith.addf %315, %316 : vector<4x130xf32>
    %318 = vector.extract_strided_slice %317 {offsets = [0, 0], sizes = [4, 96], strides = [1, 1]} : vector<4x130xf32> to vector<4x96xf32>
    %319 = arith.negf %318 : vector<4x96xf32>
    %320 = math.exp %319 : vector<4x96xf32>
    %cst_78 = arith.constant 1.000000e+00 : f32
    %321 = vector.broadcast %cst_78 : f32 to vector<4x96xf32>
    %322 = arith.addf %321, %320 : vector<4x96xf32>
    %323 = arith.divf %321, %322 : vector<4x96xf32>
    %324 = vector.extract_strided_slice %323 {offsets = [0, 0], sizes = [4, 32], strides = [1, 1]} : vector<4x96xf32> to vector<4x32xf32>
    %325 = vector.extract_strided_slice %323 {offsets = [0, 32], sizes = [4, 32], strides = [1, 1]} : vector<4x96xf32> to vector<4x32xf32>
    %326 = vector.extract_strided_slice %323 {offsets = [0, 64], sizes = [4, 32], strides = [1, 1]} : vector<4x96xf32> to vector<4x32xf32>
    %327 = vector.extract_strided_slice %317 {offsets = [0, 96], sizes = [4, 32], strides = [1, 1]} : vector<4x130xf32> to vector<4x32xf32>
    %328 = math.tanh %327 : vector<4x32xf32>
    %329 = vector.extract_strided_slice %317 {offsets = [0, 128], sizes = [4, 2], strides = [1, 1]} : vector<4x130xf32> to vector<4x2xf32>
    %330 = arith.mulf %325, %306 : vector<4x32xf32>
    %331 = arith.mulf %324, %328 : vector<4x32xf32>
    %332 = arith.addf %330, %331 : vector<4x32xf32>
    %333 = math.tanh %332 : vector<4x32xf32>
    %334 = arith.mulf %326, %333 : vector<4x32xf32>
    %335 = vector.broadcast %312 : vector<4x1xf32> to vector<4x2xf32>
    %336 = arith.mulf %335, %329 : vector<4x2xf32>
    %337 = arith.addf %294, %336 : vector<4x2xf32>
    %338 = arith.truncf %334 : vector<4x32xf32> to vector<4x32xbf16>
    %cst_79 = arith.constant dense<0.000000e+00> : vector<4x4xf32>
    %339 = tpu.matmul %338, %5, %cst_79 {dimension_numbers = #tpu.dot_dimension_numbers<[1], [0], [0], [1], [0, 0, 1, 1], [], []>} : vector<4x32xbf16>, vector<32x4xbf16>, vector<4x4xf32> -> vector<4x4xf32>
    %340 = vector.broadcast %6 : vector<1x4xf32> to vector<4x4xf32>
    %341 = arith.addf %339, %340 : vector<4x4xf32>
    %342 = vector.extract_strided_slice %341 {offsets = [0, 0], sizes = [4, 2], strides = [1, 1]} : vector<4x4xf32> to vector<4x2xf32>
    %343 = arith.negf %342 : vector<4x2xf32>
    %344 = math.exp %343 : vector<4x2xf32>
    %cst_80 = arith.constant 1.000000e+00 : f32
    %345 = vector.broadcast %cst_80 : f32 to vector<4x2xf32>
    %346 = arith.addf %345, %344 : vector<4x2xf32>
    %347 = arith.divf %345, %346 : vector<4x2xf32>
    %348 = vector.extract_strided_slice %341 {offsets = [0, 2], sizes = [4, 2], strides = [1, 1]} : vector<4x4xf32> to vector<4x2xf32>
    %cst_81 = arith.constant 1.000000e+00 : f32
    %349 = vector.broadcast %cst_81 : f32 to vector<4x2xf32>
    %350 = arith.subf %349, %347 : vector<4x2xf32>
    %351 = arith.mulf %350, %337 : vector<4x2xf32>
    %352 = arith.mulf %347, %348 : vector<4x2xf32>
    %353 = arith.addf %351, %352 : vector<4x2xf32>
    %354 = tpu.concatenate %353, %334 in 1 : vector<4x2xf32>, vector<4x32xf32> -> vector<4x34xf32>
    %355 = arith.index_cast %c4_i32 : i32 to index
    %c0_82 = arith.constant 0 : index
    %c0_83 = arith.constant 0 : index
    %356 = vector.load %arg9[%355, %c0_82, %c0_83] : memref<8x4x34xf32, #tpu.memory_space<vmem>>, vector<1x4x34xf32>
    %357 = vector.shape_cast %356 : vector<1x4x34xf32> to vector<4x34xf32>
    %358 = vector.shape_cast %354 : vector<4x34xf32> to vector<1x4x34xf32>
    tpu.vector_store %arg9[%355, %c0_82, %c0_83], %358 {strides = array<i32>} : memref<8x4x34xf32, #tpu.memory_space<vmem>>, vector<1x4x34xf32>,
    %359 = arith.addi %7, %c4_i32 : i32
    %c12_i32_84 = arith.constant 12 : i32
    %360 = arith.cmpi slt, %359, %c12_i32_84 : i32
    %361 = arith.extui %360 : i1 to i32
    %362 = arith.sitofp %361 : i32 to f32
    %363 = vector.broadcast %362 : f32 to vector<4x2xf32>
    %364 = arith.mulf %363, %353 : vector<4x2xf32>
    %cst_85 = arith.constant 1.000000e+00 : f32
    %365 = arith.subf %cst_85, %362 : f32
    %366 = vector.broadcast %365 : f32 to vector<4x2xf32>
    %367 = arith.mulf %366, %294 : vector<4x2xf32>
    %368 = arith.addf %364, %367 : vector<4x2xf32>
    %369 = vector.broadcast %362 : f32 to vector<4x32xf32>
    %370 = arith.mulf %369, %334 : vector<4x32xf32>
    %cst_86 = arith.constant 1.000000e+00 : f32
    %371 = arith.subf %cst_86, %362 : f32
    %372 = vector.broadcast %371 : f32 to vector<4x32xf32>
    %373 = arith.mulf %372, %300 : vector<4x32xf32>
    %374 = arith.addf %370, %373 : vector<4x32xf32>
    %375 = vector.broadcast %362 : f32 to vector<4x32xf32>
    %376 = arith.mulf %375, %332 : vector<4x32xf32>
    %cst_87 = arith.constant 1.000000e+00 : f32
    %377 = arith.subf %cst_87, %362 : f32
    %378 = vector.broadcast %377 : f32 to vector<4x32xf32>
    %379 = arith.mulf %378, %306 : vector<4x32xf32>
    %380 = arith.addf %376, %379 : vector<4x32xf32>
    %c5_i32 = arith.constant 5 : i32
    %381 = arith.index_cast %c5_i32 : i32 to index
    %c0_88 = arith.constant 0 : index
    %c0_89 = arith.constant 0 : index
    %382 = vector.load %arg1[%381, %c0_88, %c0_89] : memref<8x4x8xf32, #tpu.memory_space<vmem>>, vector<1x4x8xf32>
    %383 = vector.shape_cast %382 : vector<1x4x8xf32> to vector<4x8xf32>
    %384 = arith.index_cast %c5_i32 : i32 to index
    %c0_90 = arith.constant 0 : index
    %c0_91 = arith.constant 0 : index
    %385 = vector.load %arg2[%384, %c0_90, %c0_91] : memref<8x4x1xf32, #tpu.memory_space<vmem>>, vector<1x4x1xf32>
    %386 = vector.shape_cast %385 : vector<1x4x1xf32> to vector<4x1xf32>
    %387 = tpu.concatenate %368, %383, %374 in 1 : vector<4x2xf32>, vector<4x8xf32>, vector<4x32xf32> -> vector<4x42xf32>
    %388 = arith.truncf %387 : vector<4x42xf32> to vector<4x42xbf16>
    %cst_92 = arith.constant dense<0.000000e+00> : vector<4x130xf32>
    %389 = tpu.matmul %388, %3, %cst_92 {dimension_numbers = #tpu.dot_dimension_numbers<[1], [0], [0], [1], [0, 0, 1, 1], [], []>} : vector<4x42xbf16>, vector<42x130xbf16>, vector<4x130xf32> -> vector<4x130xf32>
    %390 = vector.broadcast %4 : vector<1x130xf32> to vector<4x130xf32>
    %391 = arith.addf %389, %390 : vector<4x130xf32>
    %392 = vector.extract_strided_slice %391 {offsets = [0, 0], sizes = [4, 96], strides = [1, 1]} : vector<4x130xf32> to vector<4x96xf32>
    %393 = arith.negf %392 : vector<4x96xf32>
    %394 = math.exp %393 : vector<4x96xf32>
    %cst_93 = arith.constant 1.000000e+00 : f32
    %395 = vector.broadcast %cst_93 : f32 to vector<4x96xf32>
    %396 = arith.addf %395, %394 : vector<4x96xf32>
    %397 = arith.divf %395, %396 : vector<4x96xf32>
    %398 = vector.extract_strided_slice %397 {offsets = [0, 0], sizes = [4, 32], strides = [1, 1]} : vector<4x96xf32> to vector<4x32xf32>
    %399 = vector.extract_strided_slice %397 {offsets = [0, 32], sizes = [4, 32], strides = [1, 1]} : vector<4x96xf32> to vector<4x32xf32>
    %400 = vector.extract_strided_slice %397 {offsets = [0, 64], sizes = [4, 32], strides = [1, 1]} : vector<4x96xf32> to vector<4x32xf32>
    %401 = vector.extract_strided_slice %391 {offsets = [0, 96], sizes = [4, 32], strides = [1, 1]} : vector<4x130xf32> to vector<4x32xf32>
    %402 = math.tanh %401 : vector<4x32xf32>
    %403 = vector.extract_strided_slice %391 {offsets = [0, 128], sizes = [4, 2], strides = [1, 1]} : vector<4x130xf32> to vector<4x2xf32>
    %404 = arith.mulf %399, %380 : vector<4x32xf32>
    %405 = arith.mulf %398, %402 : vector<4x32xf32>
    %406 = arith.addf %404, %405 : vector<4x32xf32>
    %407 = math.tanh %406 : vector<4x32xf32>
    %408 = arith.mulf %400, %407 : vector<4x32xf32>
    %409 = vector.broadcast %386 : vector<4x1xf32> to vector<4x2xf32>
    %410 = arith.mulf %409, %403 : vector<4x2xf32>
    %411 = arith.addf %368, %410 : vector<4x2xf32>
    %412 = arith.truncf %408 : vector<4x32xf32> to vector<4x32xbf16>
    %cst_94 = arith.constant dense<0.000000e+00> : vector<4x4xf32>
    %413 = tpu.matmul %412, %5, %cst_94 {dimension_numbers = #tpu.dot_dimension_numbers<[1], [0], [0], [1], [0, 0, 1, 1], [], []>} : vector<4x32xbf16>, vector<32x4xbf16>, vector<4x4xf32> -> vector<4x4xf32>
    %414 = vector.broadcast %6 : vector<1x4xf32> to vector<4x4xf32>
    %415 = arith.addf %413, %414 : vector<4x4xf32>
    %416 = vector.extract_strided_slice %415 {offsets = [0, 0], sizes = [4, 2], strides = [1, 1]} : vector<4x4xf32> to vector<4x2xf32>
    %417 = arith.negf %416 : vector<4x2xf32>
    %418 = math.exp %417 : vector<4x2xf32>
    %cst_95 = arith.constant 1.000000e+00 : f32
    %419 = vector.broadcast %cst_95 : f32 to vector<4x2xf32>
    %420 = arith.addf %419, %418 : vector<4x2xf32>
    %421 = arith.divf %419, %420 : vector<4x2xf32>
    %422 = vector.extract_strided_slice %415 {offsets = [0, 2], sizes = [4, 2], strides = [1, 1]} : vector<4x4xf32> to vector<4x2xf32>
    %cst_96 = arith.constant 1.000000e+00 : f32
    %423 = vector.broadcast %cst_96 : f32 to vector<4x2xf32>
    %424 = arith.subf %423, %421 : vector<4x2xf32>
    %425 = arith.mulf %424, %411 : vector<4x2xf32>
    %426 = arith.mulf %421, %422 : vector<4x2xf32>
    %427 = arith.addf %425, %426 : vector<4x2xf32>
    %428 = tpu.concatenate %427, %408 in 1 : vector<4x2xf32>, vector<4x32xf32> -> vector<4x34xf32>
    %429 = arith.index_cast %c5_i32 : i32 to index
    %c0_97 = arith.constant 0 : index
    %c0_98 = arith.constant 0 : index
    %430 = vector.load %arg9[%429, %c0_97, %c0_98] : memref<8x4x34xf32, #tpu.memory_space<vmem>>, vector<1x4x34xf32>
    %431 = vector.shape_cast %430 : vector<1x4x34xf32> to vector<4x34xf32>
    %432 = vector.shape_cast %428 : vector<4x34xf32> to vector<1x4x34xf32>
    tpu.vector_store %arg9[%429, %c0_97, %c0_98], %432 {strides = array<i32>} : memref<8x4x34xf32, #tpu.memory_space<vmem>>, vector<1x4x34xf32>,
    %433 = arith.addi %7, %c5_i32 : i32
    %c12_i32_99 = arith.constant 12 : i32
    %434 = arith.cmpi slt, %433, %c12_i32_99 : i32
    %435 = arith.extui %434 : i1 to i32
    %436 = arith.sitofp %435 : i32 to f32
    %437 = vector.broadcast %436 : f32 to vector<4x2xf32>
    %438 = arith.mulf %437, %427 : vector<4x2xf32>
    %cst_100 = arith.constant 1.000000e+00 : f32
    %439 = arith.subf %cst_100, %436 : f32
    %440 = vector.broadcast %439 : f32 to vector<4x2xf32>
    %441 = arith.mulf %440, %368 : vector<4x2xf32>
    %442 = arith.addf %438, %441 : vector<4x2xf32>
    %443 = vector.broadcast %436 : f32 to vector<4x32xf32>
    %444 = arith.mulf %443, %408 : vector<4x32xf32>
    %cst_101 = arith.constant 1.000000e+00 : f32
    %445 = arith.subf %cst_101, %436 : f32
    %446 = vector.broadcast %445 : f32 to vector<4x32xf32>
    %447 = arith.mulf %446, %374 : vector<4x32xf32>
    %448 = arith.addf %444, %447 : vector<4x32xf32>
    %449 = vector.broadcast %436 : f32 to vector<4x32xf32>
    %450 = arith.mulf %449, %406 : vector<4x32xf32>
    %cst_102 = arith.constant 1.000000e+00 : f32
    %451 = arith.subf %cst_102, %436 : f32
    %452 = vector.broadcast %451 : f32 to vector<4x32xf32>
    %453 = arith.mulf %452, %380 : vector<4x32xf32>
    %454 = arith.addf %450, %453 : vector<4x32xf32>
    %c6_i32 = arith.constant 6 : i32
    %455 = arith.index_cast %c6_i32 : i32 to index
    %c0_103 = arith.constant 0 : index
    %c0_104 = arith.constant 0 : index
    %456 = vector.load %arg1[%455, %c0_103, %c0_104] : memref<8x4x8xf32, #tpu.memory_space<vmem>>, vector<1x4x8xf32>
    %457 = vector.shape_cast %456 : vector<1x4x8xf32> to vector<4x8xf32>
    %458 = arith.index_cast %c6_i32 : i32 to index
    %c0_105 = arith.constant 0 : index
    %c0_106 = arith.constant 0 : index
    %459 = vector.load %arg2[%458, %c0_105, %c0_106] : memref<8x4x1xf32, #tpu.memory_space<vmem>>, vector<1x4x1xf32>
    %460 = vector.shape_cast %459 : vector<1x4x1xf32> to vector<4x1xf32>
    %461 = tpu.concatenate %442, %457, %448 in 1 : vector<4x2xf32>, vector<4x8xf32>, vector<4x32xf32> -> vector<4x42xf32>
    %462 = arith.truncf %461 : vector<4x42xf32> to vector<4x42xbf16>
    %cst_107 = arith.constant dense<0.000000e+00> : vector<4x130xf32>
    %463 = tpu.matmul %462, %3, %cst_107 {dimension_numbers = #tpu.dot_dimension_numbers<[1], [0], [0], [1], [0, 0, 1, 1], [], []>} : vector<4x42xbf16>, vector<42x130xbf16>, vector<4x130xf32> -> vector<4x130xf32>
    %464 = vector.broadcast %4 : vector<1x130xf32> to vector<4x130xf32>
    %465 = arith.addf %463, %464 : vector<4x130xf32>
    %466 = vector.extract_strided_slice %465 {offsets = [0, 0], sizes = [4, 96], strides = [1, 1]} : vector<4x130xf32> to vector<4x96xf32>
    %467 = arith.negf %466 : vector<4x96xf32>
    %468 = math.exp %467 : vector<4x96xf32>
    %cst_108 = arith.constant 1.000000e+00 : f32
    %469 = vector.broadcast %cst_108 : f32 to vector<4x96xf32>
    %470 = arith.addf %469, %468 : vector<4x96xf32>
    %471 = arith.divf %469, %470 : vector<4x96xf32>
    %472 = vector.extract_strided_slice %471 {offsets = [0, 0], sizes = [4, 32], strides = [1, 1]} : vector<4x96xf32> to vector<4x32xf32>
    %473 = vector.extract_strided_slice %471 {offsets = [0, 32], sizes = [4, 32], strides = [1, 1]} : vector<4x96xf32> to vector<4x32xf32>
    %474 = vector.extract_strided_slice %471 {offsets = [0, 64], sizes = [4, 32], strides = [1, 1]} : vector<4x96xf32> to vector<4x32xf32>
    %475 = vector.extract_strided_slice %465 {offsets = [0, 96], sizes = [4, 32], strides = [1, 1]} : vector<4x130xf32> to vector<4x32xf32>
    %476 = math.tanh %475 : vector<4x32xf32>
    %477 = vector.extract_strided_slice %465 {offsets = [0, 128], sizes = [4, 2], strides = [1, 1]} : vector<4x130xf32> to vector<4x2xf32>
    %478 = arith.mulf %473, %454 : vector<4x32xf32>
    %479 = arith.mulf %472, %476 : vector<4x32xf32>
    %480 = arith.addf %478, %479 : vector<4x32xf32>
    %481 = math.tanh %480 : vector<4x32xf32>
    %482 = arith.mulf %474, %481 : vector<4x32xf32>
    %483 = vector.broadcast %460 : vector<4x1xf32> to vector<4x2xf32>
    %484 = arith.mulf %483, %477 : vector<4x2xf32>
    %485 = arith.addf %442, %484 : vector<4x2xf32>
    %486 = arith.truncf %482 : vector<4x32xf32> to vector<4x32xbf16>
    %cst_109 = arith.constant dense<0.000000e+00> : vector<4x4xf32>
    %487 = tpu.matmul %486, %5, %cst_109 {dimension_numbers = #tpu.dot_dimension_numbers<[1], [0], [0], [1], [0, 0, 1, 1], [], []>} : vector<4x32xbf16>, vector<32x4xbf16>, vector<4x4xf32> -> vector<4x4xf32>
    %488 = vector.broadcast %6 : vector<1x4xf32> to vector<4x4xf32>
    %489 = arith.addf %487, %488 : vector<4x4xf32>
    %490 = vector.extract_strided_slice %489 {offsets = [0, 0], sizes = [4, 2], strides = [1, 1]} : vector<4x4xf32> to vector<4x2xf32>
    %491 = arith.negf %490 : vector<4x2xf32>
    %492 = math.exp %491 : vector<4x2xf32>
    %cst_110 = arith.constant 1.000000e+00 : f32
    %493 = vector.broadcast %cst_110 : f32 to vector<4x2xf32>
    %494 = arith.addf %493, %492 : vector<4x2xf32>
    %495 = arith.divf %493, %494 : vector<4x2xf32>
    %496 = vector.extract_strided_slice %489 {offsets = [0, 2], sizes = [4, 2], strides = [1, 1]} : vector<4x4xf32> to vector<4x2xf32>
    %cst_111 = arith.constant 1.000000e+00 : f32
    %497 = vector.broadcast %cst_111 : f32 to vector<4x2xf32>
    %498 = arith.subf %497, %495 : vector<4x2xf32>
    %499 = arith.mulf %498, %485 : vector<4x2xf32>
    %500 = arith.mulf %495, %496 : vector<4x2xf32>
    %501 = arith.addf %499, %500 : vector<4x2xf32>
    %502 = tpu.concatenate %501, %482 in 1 : vector<4x2xf32>, vector<4x32xf32> -> vector<4x34xf32>
    %503 = arith.index_cast %c6_i32 : i32 to index
    %c0_112 = arith.constant 0 : index
    %c0_113 = arith.constant 0 : index
    %504 = vector.load %arg9[%503, %c0_112, %c0_113] : memref<8x4x34xf32, #tpu.memory_space<vmem>>, vector<1x4x34xf32>
    %505 = vector.shape_cast %504 : vector<1x4x34xf32> to vector<4x34xf32>
    %506 = vector.shape_cast %502 : vector<4x34xf32> to vector<1x4x34xf32>
    tpu.vector_store %arg9[%503, %c0_112, %c0_113], %506 {strides = array<i32>} : memref<8x4x34xf32, #tpu.memory_space<vmem>>, vector<1x4x34xf32>,
    %507 = arith.addi %7, %c6_i32 : i32
    %c12_i32_114 = arith.constant 12 : i32
    %508 = arith.cmpi slt, %507, %c12_i32_114 : i32
    %509 = arith.extui %508 : i1 to i32
    %510 = arith.sitofp %509 : i32 to f32
    %511 = vector.broadcast %510 : f32 to vector<4x2xf32>
    %512 = arith.mulf %511, %501 : vector<4x2xf32>
    %cst_115 = arith.constant 1.000000e+00 : f32
    %513 = arith.subf %cst_115, %510 : f32
    %514 = vector.broadcast %513 : f32 to vector<4x2xf32>
    %515 = arith.mulf %514, %442 : vector<4x2xf32>
    %516 = arith.addf %512, %515 : vector<4x2xf32>
    %517 = vector.broadcast %510 : f32 to vector<4x32xf32>
    %518 = arith.mulf %517, %482 : vector<4x32xf32>
    %cst_116 = arith.constant 1.000000e+00 : f32
    %519 = arith.subf %cst_116, %510 : f32
    %520 = vector.broadcast %519 : f32 to vector<4x32xf32>
    %521 = arith.mulf %520, %448 : vector<4x32xf32>
    %522 = arith.addf %518, %521 : vector<4x32xf32>
    %523 = vector.broadcast %510 : f32 to vector<4x32xf32>
    %524 = arith.mulf %523, %480 : vector<4x32xf32>
    %cst_117 = arith.constant 1.000000e+00 : f32
    %525 = arith.subf %cst_117, %510 : f32
    %526 = vector.broadcast %525 : f32 to vector<4x32xf32>
    %527 = arith.mulf %526, %454 : vector<4x32xf32>
    %528 = arith.addf %524, %527 : vector<4x32xf32>
    %c7_i32 = arith.constant 7 : i32
    %529 = arith.index_cast %c7_i32 : i32 to index
    %c0_118 = arith.constant 0 : index
    %c0_119 = arith.constant 0 : index
    %530 = vector.load %arg1[%529, %c0_118, %c0_119] : memref<8x4x8xf32, #tpu.memory_space<vmem>>, vector<1x4x8xf32>
    %531 = vector.shape_cast %530 : vector<1x4x8xf32> to vector<4x8xf32>
    %532 = arith.index_cast %c7_i32 : i32 to index
    %c0_120 = arith.constant 0 : index
    %c0_121 = arith.constant 0 : index
    %533 = vector.load %arg2[%532, %c0_120, %c0_121] : memref<8x4x1xf32, #tpu.memory_space<vmem>>, vector<1x4x1xf32>
    %534 = vector.shape_cast %533 : vector<1x4x1xf32> to vector<4x1xf32>
    %535 = tpu.concatenate %516, %531, %522 in 1 : vector<4x2xf32>, vector<4x8xf32>, vector<4x32xf32> -> vector<4x42xf32>
    %536 = arith.truncf %535 : vector<4x42xf32> to vector<4x42xbf16>
    %cst_122 = arith.constant dense<0.000000e+00> : vector<4x130xf32>
    %537 = tpu.matmul %536, %3, %cst_122 {dimension_numbers = #tpu.dot_dimension_numbers<[1], [0], [0], [1], [0, 0, 1, 1], [], []>} : vector<4x42xbf16>, vector<42x130xbf16>, vector<4x130xf32> -> vector<4x130xf32>
    %538 = vector.broadcast %4 : vector<1x130xf32> to vector<4x130xf32>
    %539 = arith.addf %537, %538 : vector<4x130xf32>
    %540 = vector.extract_strided_slice %539 {offsets = [0, 0], sizes = [4, 96], strides = [1, 1]} : vector<4x130xf32> to vector<4x96xf32>
    %541 = arith.negf %540 : vector<4x96xf32>
    %542 = math.exp %541 : vector<4x96xf32>
    %cst_123 = arith.constant 1.000000e+00 : f32
    %543 = vector.broadcast %cst_123 : f32 to vector<4x96xf32>
    %544 = arith.addf %543, %542 : vector<4x96xf32>
    %545 = arith.divf %543, %544 : vector<4x96xf32>
    %546 = vector.extract_strided_slice %545 {offsets = [0, 0], sizes = [4, 32], strides = [1, 1]} : vector<4x96xf32> to vector<4x32xf32>
    %547 = vector.extract_strided_slice %545 {offsets = [0, 32], sizes = [4, 32], strides = [1, 1]} : vector<4x96xf32> to vector<4x32xf32>
    %548 = vector.extract_strided_slice %545 {offsets = [0, 64], sizes = [4, 32], strides = [1, 1]} : vector<4x96xf32> to vector<4x32xf32>
    %549 = vector.extract_strided_slice %539 {offsets = [0, 96], sizes = [4, 32], strides = [1, 1]} : vector<4x130xf32> to vector<4x32xf32>
    %550 = math.tanh %549 : vector<4x32xf32>
    %551 = vector.extract_strided_slice %539 {offsets = [0, 128], sizes = [4, 2], strides = [1, 1]} : vector<4x130xf32> to vector<4x2xf32>
    %552 = arith.mulf %547, %528 : vector<4x32xf32>
    %553 = arith.mulf %546, %550 : vector<4x32xf32>
    %554 = arith.addf %552, %553 : vector<4x32xf32>
    %555 = math.tanh %554 : vector<4x32xf32>
    %556 = arith.mulf %548, %555 : vector<4x32xf32>
    %557 = vector.broadcast %534 : vector<4x1xf32> to vector<4x2xf32>
    %558 = arith.mulf %557, %551 : vector<4x2xf32>
    %559 = arith.addf %516, %558 : vector<4x2xf32>
    %560 = arith.truncf %556 : vector<4x32xf32> to vector<4x32xbf16>
    %cst_124 = arith.constant dense<0.000000e+00> : vector<4x4xf32>
    %561 = tpu.matmul %560, %5, %cst_124 {dimension_numbers = #tpu.dot_dimension_numbers<[1], [0], [0], [1], [0, 0, 1, 1], [], []>} : vector<4x32xbf16>, vector<32x4xbf16>, vector<4x4xf32> -> vector<4x4xf32>
    %562 = vector.broadcast %6 : vector<1x4xf32> to vector<4x4xf32>
    %563 = arith.addf %561, %562 : vector<4x4xf32>
    %564 = vector.extract_strided_slice %563 {offsets = [0, 0], sizes = [4, 2], strides = [1, 1]} : vector<4x4xf32> to vector<4x2xf32>
    %565 = arith.negf %564 : vector<4x2xf32>
    %566 = math.exp %565 : vector<4x2xf32>
    %cst_125 = arith.constant 1.000000e+00 : f32
    %567 = vector.broadcast %cst_125 : f32 to vector<4x2xf32>
    %568 = arith.addf %567, %566 : vector<4x2xf32>
    %569 = arith.divf %567, %568 : vector<4x2xf32>
    %570 = vector.extract_strided_slice %563 {offsets = [0, 2], sizes = [4, 2], strides = [1, 1]} : vector<4x4xf32> to vector<4x2xf32>
    %cst_126 = arith.constant 1.000000e+00 : f32
    %571 = vector.broadcast %cst_126 : f32 to vector<4x2xf32>
    %572 = arith.subf %571, %569 : vector<4x2xf32>
    %573 = arith.mulf %572, %559 : vector<4x2xf32>
    %574 = arith.mulf %569, %570 : vector<4x2xf32>
    %575 = arith.addf %573, %574 : vector<4x2xf32>
    %576 = tpu.concatenate %575, %556 in 1 : vector<4x2xf32>, vector<4x32xf32> -> vector<4x34xf32>
    %577 = arith.index_cast %c7_i32 : i32 to index
    %c0_127 = arith.constant 0 : index
    %c0_128 = arith.constant 0 : index
    %578 = vector.load %arg9[%577, %c0_127, %c0_128] : memref<8x4x34xf32, #tpu.memory_space<vmem>>, vector<1x4x34xf32>
    %579 = vector.shape_cast %578 : vector<1x4x34xf32> to vector<4x34xf32>
    %580 = vector.shape_cast %576 : vector<4x34xf32> to vector<1x4x34xf32>
    tpu.vector_store %arg9[%577, %c0_127, %c0_128], %580 {strides = array<i32>} : memref<8x4x34xf32, #tpu.memory_space<vmem>>, vector<1x4x34xf32>,
    %581 = arith.addi %7, %c7_i32 : i32
    %c12_i32_129 = arith.constant 12 : i32
    %582 = arith.cmpi slt, %581, %c12_i32_129 : i32
    %583 = arith.extui %582 : i1 to i32
    %584 = arith.sitofp %583 : i32 to f32
    %585 = vector.broadcast %584 : f32 to vector<4x2xf32>
    %586 = arith.mulf %585, %575 : vector<4x2xf32>
    %cst_130 = arith.constant 1.000000e+00 : f32
    %587 = arith.subf %cst_130, %584 : f32
    %588 = vector.broadcast %587 : f32 to vector<4x2xf32>
    %589 = arith.mulf %588, %516 : vector<4x2xf32>
    %590 = arith.addf %586, %589 : vector<4x2xf32>
    %591 = vector.broadcast %584 : f32 to vector<4x32xf32>
    %592 = arith.mulf %591, %556 : vector<4x32xf32>
    %cst_131 = arith.constant 1.000000e+00 : f32
    %593 = arith.subf %cst_131, %584 : f32
    %594 = vector.broadcast %593 : f32 to vector<4x32xf32>
    %595 = arith.mulf %594, %522 : vector<4x32xf32>
    %596 = arith.addf %592, %595 : vector<4x32xf32>
    %597 = vector.broadcast %584 : f32 to vector<4x32xf32>
    %598 = arith.mulf %597, %554 : vector<4x32xf32>
    %cst_132 = arith.constant 1.000000e+00 : f32
    %599 = arith.subf %cst_132, %584 : f32
    %600 = vector.broadcast %599 : f32 to vector<4x32xf32>
    %601 = arith.mulf %600, %528 : vector<4x32xf32>
    %602 = arith.addf %598, %601 : vector<4x32xf32>
    %c8_i32_133 = arith.constant 8 : i32
    %c0_134 = arith.constant 0 : index
    %c0_135 = arith.constant 0 : index
    %603 = vector.load %arg14[%c0_134, %c0_135] : memref<4x2xf32, #tpu.memory_space<vmem>>, vector<4x2xf32>
    tpu.vector_store %arg14[%c0_134, %c0_135], %590 {strides = array<i32>} : memref<4x2xf32, #tpu.memory_space<vmem>>, vector<4x2xf32>,
    %c0_136 = arith.constant 0 : index
    %c0_137 = arith.constant 0 : index
    %604 = vector.load %arg12[%c0_136, %c0_137] : memref<4x32xf32, #tpu.memory_space<vmem>>, vector<4x32xf32>
    tpu.vector_store %arg12[%c0_136, %c0_137], %596 {strides = array<i32>} : memref<4x32xf32, #tpu.memory_space<vmem>>, vector<4x32xf32>,
    %c0_138 = arith.constant 0 : index
    %c0_139 = arith.constant 0 : index
    %605 = vector.load %arg13[%c0_138, %c0_139] : memref<4x32xf32, #tpu.memory_space<vmem>>, vector<4x32xf32>
    tpu.vector_store %arg13[%c0_138, %c0_139], %602 {strides = array<i32>} : memref<4x32xf32, #tpu.memory_space<vmem>>, vector<4x32xf32>,
    %c1_i32_140 = arith.constant 1 : i32
    %606 = arith.cmpi eq, %arg0, %c1_i32_140 : i32
    %607 = arith.extui %606 : i1 to i32
    %c0_i32_141 = arith.constant 0 : i32
    %608 = arith.cmpi ne, %607, %c0_i32_141 : i32
    scf.if %608 {
      %609 = tpu.concatenate %590, %596 in 1 : vector<4x2xf32>, vector<4x32xf32> -> vector<4x34xf32>
      %c0_142 = arith.constant 0 : index
      %c0_143 = arith.constant 0 : index
      %c0_144 = arith.constant 0 : index
      %610 = vector.load %arg10[%c0_142, %c0_143, %c0_144] : memref<1x4x34xf32, #tpu.memory_space<vmem>>, vector<1x4x34xf32>
      %611 = vector.shape_cast %610 : vector<1x4x34xf32> to vector<4x34xf32>
      %612 = vector.shape_cast %609 : vector<4x34xf32> to vector<1x4x34xf32>
      tpu.vector_store %arg10[%c0_142, %c0_143, %c0_144], %612 {strides = array<i32>} : memref<1x4x34xf32, #tpu.memory_space<vmem>>, vector<1x4x34xf32>,
      %c0_145 = arith.constant 0 : index
      %c0_146 = arith.constant 0 : index
      %c0_147 = arith.constant 0 : index
      %613 = vector.load %arg4[%c0_145, %c0_146, %c0_147] : memref<1x4x34xf32, #tpu.memory_space<vmem>>, vector<1x4x2xf32>
      %614 = vector.shape_cast %613 : vector<1x4x2xf32> to vector<4x2xf32>
      %615 = tpu.concatenate %614, %602 in 1 : vector<4x2xf32>, vector<4x32xf32> -> vector<4x34xf32>
      %c0_148 = arith.constant 0 : index
      %c0_149 = arith.constant 0 : index
      %c0_150 = arith.constant 0 : index
      %616 = vector.load %arg11[%c0_148, %c0_149, %c0_150] : memref<1x4x34xf32, #tpu.memory_space<vmem>>, vector<1x4x34xf32>
      %617 = vector.shape_cast %616 : vector<1x4x34xf32> to vector<4x34xf32>
      %618 = vector.shape_cast %615 : vector<4x34xf32> to vector<1x4x34xf32>
      tpu.vector_store %arg11[%c0_148, %c0_149, %c0_150], %618 {strides = array<i32>} : memref<1x4x34xf32, #tpu.memory_space<vmem>>, vector<1x4x34xf32>,
    } else {
    }
    return
  }
  func.func @transform_0(%arg0: i32) -> (i32, i32, i32) {
    %c0_i32 = arith.constant 0 : i32
    %c0_i32_0 = arith.constant 0 : i32
    %c0_i32_1 = arith.constant 0 : i32
    return %arg0, %c0_i32, %c0_i32_0 : i32, i32, i32
  }
  func.func @transform_1(%arg0: i32) -> (i32, i32, i32) {
    %c0_i32 = arith.constant 0 : i32
    %c0_i32_0 = arith.constant 0 : i32
    %c0_i32_1 = arith.constant 0 : i32
    return %arg0, %c0_i32, %c0_i32_0 : i32, i32, i32
  }
  func.func @transform_2(%arg0: i32) -> (i32, i32, i32) {
    %c0_i32 = arith.constant 0 : i32
    %c0_i32_0 = arith.constant 0 : i32
    %c0_i32_1 = arith.constant 0 : i32
    %c0_i32_2 = arith.constant 0 : i32
    return %c0_i32, %c0_i32_0, %c0_i32_1 : i32, i32, i32
  }
  func.func @transform_3(%arg0: i32) -> (i32, i32, i32) {
    %c0_i32 = arith.constant 0 : i32
    %c0_i32_0 = arith.constant 0 : i32
    %c0_i32_1 = arith.constant 0 : i32
    %c0_i32_2 = arith.constant 0 : i32
    return %c0_i32, %c0_i32_0, %c0_i32_1 : i32, i32, i32
  }
  func.func @transform_4(%arg0: i32) -> (i32, i32) {
    %c0_i32 = arith.constant 0 : i32
    %c0_i32_0 = arith.constant 0 : i32
    %c0_i32_1 = arith.constant 0 : i32
    return %c0_i32, %c0_i32_0 : i32, i32
  }
  func.func @transform_5(%arg0: i32) -> (i32, i32) {
    %c0_i32 = arith.constant 0 : i32
    %c0_i32_0 = arith.constant 0 : i32
    %c0_i32_1 = arith.constant 0 : i32
    return %c0_i32, %c0_i32_0 : i32, i32
  }
  func.func @transform_6(%arg0: i32) -> (i32, i32) {
    %c0_i32 = arith.constant 0 : i32
    %c0_i32_0 = arith.constant 0 : i32
    %c0_i32_1 = arith.constant 0 : i32
    return %c0_i32, %c0_i32_0 : i32, i32
  }
  func.func @transform_7(%arg0: i32) -> (i32, i32) {
    %c0_i32 = arith.constant 0 : i32
    %c0_i32_0 = arith.constant 0 : i32
    %c0_i32_1 = arith.constant 0 : i32
    return %c0_i32, %c0_i32_0 : i32, i32
  }
  func.func @transform_8(%arg0: i32) -> (i32, i32, i32) {
    %c0_i32 = arith.constant 0 : i32
    %c0_i32_0 = arith.constant 0 : i32
    %c0_i32_1 = arith.constant 0 : i32
    return %arg0, %c0_i32, %c0_i32_0 : i32, i32, i32
  }
  func.func @transform_9(%arg0: i32) -> (i32, i32, i32) {
    %c0_i32 = arith.constant 0 : i32
    %c0_i32_0 = arith.constant 0 : i32
    %c0_i32_1 = arith.constant 0 : i32
    %c0_i32_2 = arith.constant 0 : i32
    return %c0_i32, %c0_i32_0, %c0_i32_1 : i32, i32, i32
  }
  func.func @transform_10(%arg0: i32) -> (i32, i32, i32) {
    %c0_i32 = arith.constant 0 : i32
    %c0_i32_0 = arith.constant 0 : i32
    %c0_i32_1 = arith.constant 0 : i32
    %c0_i32_2 = arith.constant 0 : i32
    return %c0_i32, %c0_i32_0, %c0_i32_1 : i32, i32, i32
  }
}

</mosaic_0001>

<bundles_post_ra>
// kernel: tpu_custom_call.1
= control target key start
LH: loop header
LB: loop body
LE: loop exit
PB: predicated region body
PF: predicated region fallthrough
CT: control target
= control target key end

     0   :  { %16 = vsyncpa [#allocation6], 0  ;;  %s3382_s0 = inlined_call_operand.vmem [shape: f32[16,4,8], index: 0, kind: input, shape index: {}]   ;;  %s3383_s1 = inlined_call_operand.vmem [shape: f32[16,4,1], index: 1, kind: input, shape index: {}]   ;;  %s3384_s2 = inlined_call_operand.vmem [shape: f32[1,4,34], index: 2, kind: input, shape index: {}]   ;;  %s3385_s3 = inlined_call_operand.vmem [shape: f32[1,4,34], index: 3, kind: input, shape index: {}]   ;;  %s3386_s4 = inlined_call_operand.vmem [shape: bf16[42,130], index: 4, kind: input, shape index: {}]   ;;  %s3387_s5 = inlined_call_operand.vmem [shape: f32[1,130], index: 5, kind: input, shape index: {}]   ;;  %s3388_s6 = inlined_call_operand.vmem [shape: bf16[32,4], index: 6, kind: input, shape index: {}]   ;;  %s3389_s7 = inlined_call_operand.vmem [shape: f32[1,4], index: 7, kind: input, shape index: {}]   ;;  %s3390_s8 = inlined_call_operand.hbm [shape: f32[16,4,34], index: 8, kind: output, shape index: {0}]   ;;  %s3391_s9 = inlined_call_operand.hbm [shape: f32[1,4,34], index: 9, kind: output, shape index: {1}]   ;;  %s3392_s10 = inlined_call_operand.hbm [shape: f32[1,4,34], index: 10, kind: output, shape index: {2}]  }
   0x1   :  { %18 = vsyncpa [#allocation6 + $0x1], 0 }
   0x2   :  { %19 = vsyncpa [#allocation8], 0  ;;  %s2595_s13 = smov 0   ;;  %s2597_s14 = smov 0  }
   0x3   :  { %s2599_s15 = smov 0   ;;  %s2601_s16 = smov 0  }
   0x4 LB: > { %3402 = sst [smem:[#allocation12_spill]] %s2516_s15  ;;  %s2616_s17 = sadd.s32 4294967295, %s2520_s16   ;;  %s2520_s16 = sphi %s2601_s16, %s3412_s16   ;;  %s2516_s15 = sphi %s2599_s15, %s3414_s15   ;;  %s2512_s14 = sphi %s2597_s14, %s3416_s14   ;;  %s2508_s13 = sphi %s2595_s13, %s3415_s13  }
   0x5   : > { %s2044_s18 = sadd.s32 4294967294, %s2520_s16   ;;  %s2620_s19 = sadd.s32 1, %s2520_s16  }
   0x6   : > { %3403 = sst [smem:[#allocation13_spill]] %s2620_s19  ;;  %s210_s20 = sadd.s32 1, %s2516_s15 }
   0x7   : > { %s207_s21 = ssub.s32 %s2520_s16, %s2620_s19  ;;  %p220_p0 = scmp.ne.s32.totalorder %s2516_s15, %s2512_s14 }
   0x8   : > { %p208_p1 = scmp.eq.s32.totalorder %s207_s21, 0  ;;  %p221_p2 = scmp.eq.s32.totalorder %s2616_s17, 1 }
   0x9   : > { %p226_p3 = scmp.ne.s32.totalorder %s2512_s14, %s2508_s13  ;;  %p227_p4 = scmp.eq.s32.totalorder %s2044_s18, 1 }
   0xa   : > { %s2631_s22 = scalar_select %p208_p1, %s2516_s15, %s210_s20  }
   0xb   : > { %p2635_p5 = por %p221_p2, %p220_p0  ;;  %p2639_p6 = por %p227_p4, %p226_p3 }
   0xc   : > { %3404 = sst [smem:[#allocation14_spill]] %s2631_s22  ;;  %p2047_p7 = scmp.ge.s32.totalorder %s2520_s16, 1 }
   0xd   : > { %p323_p8 = scmp.lt.s32.totalorder %s2520_s16, 3 }
   0xf   : > { %p324_p9 = pnand %p2047_p7, %p323_p8 }
  0x10   : > { %s3394_s25 = sand.u32 (!%p324_p9), 1, %s2512_s14   ;;  %s2647_s26 = sshll.u32 (!%p324_p9), %s2616_s17, 3 }
  0x11   : > { %327 = sbr.rel (%p324_p9) target bundleno = 8547 (0x2163), region = 52  ;;  %s2048_s27 = sshll.u32 (!%p324_p9), %s3394_s25, 5 }
  0x12   : > { %p367_p10 = scmp.lt.s32.totalorder (!%p324_p9), %s2647_s26, 15  ;;  %s2663_s22 = scalar_lea.vmem (!%p324_p9), [#allocation5], %s2048_s27 }
  0x13   : > { %p2053_p11 = scmp.ne.s32.totalorder (!%p324_p9), %s2616_s17, 0 }
  0x16   : > { %s368_s28 = scalar_select %p367_p10, %s2647_s26, 15 }
  0x17   : > { %383 = sbr.rel (%p2053_p11) target bundleno = 149 (0x95), region = 56 }
  0x18   : > { %s2050_s29 = sshll.u32 %s368_s28, 2  ;;  %s2522_s28 = smov (!%p2053_p11), 126  }
  0x19   : > { %s2656_s12 = scalar_lea.vmem %s3382_s0, %s2050_s29  ;;  %s2661_s21 = scalar_lea.vmem %s3383_s1, %s2050_s29 }
  0x1c   : > { %v387_v0 = vld [vmem:[%s3384_s2] sm:$0xf]  ;;  %vm385_vm0 = vcmask 11264   ;;  %vm392_vm1 = vcmask 257024  }
  0x1d   : > { %389 = vrot.lane.b32.xlu0 %v387_v0, %s2522_s28  ;;  %v384_v1 = vld [vmem:[%s3384_s2] sm:$0xf] }
  0x1e   : > { %v394_v2 = vld [vmem:[%s3385_s3] sm:$0xf]  ;;  %386 = vst.msk [vmem:[#allocation4] sm:$0xf] %vm385_vm0, %v384_v1 }
  0x21   : > { %396 = vrot.lane.b32.xlu0 %v394_v2, %s2522_s28 }
  0x8f   : > { %v390_v3 = vpop.permute.xlu0 %389 }
  0x90   : > { %393 = vst.msk [vmem:[#allocation2] sm:$0xf] %vm392_vm1, %v390_v3 }
  0x93   : > { %v397_v4 = vpop.permute.xlu0 %396 }
  0x94   : > { %399 = vst.msk [vmem:[#allocation3] sm:$0xf] %vm392_vm1, %v397_v4 }
  0x95 PF: > { %v416_v5 = vld [vmem:[%s2656_s12] sm:$0xf]  ;;  %s2523_s15 = smov 2   ;;  %v2682_v7 = vld [vmem:[%s3386_s4 + $0x24] ss:$8 sps:$4 sm:$0x1f]   ;;  %v432_v21 = vlaneseq }
  0x96   : > { %419 = vrot.lane.b32.xlu0 %v416_v5, %s2523_s15  ;;  %vm474_vm2 = vcmask 1044480   ;;  %v2295_v8 = vld [vmem:[%s3386_s4 + $0x20] ss:$8 sps:$4 sm:$0x1f]   ;;  %v2692_v9 = vld [vmem:[%s3386_s4 + $0x14] ss:$8 sps:$4 sm:$0xff]  }
  0x97   : > { %v2676_v6 = vld [vmem:[#allocation2] sm:$0xf]  ;;  %2061 = vmatprep.subr.msk.bf16.mxu0 %vm474_vm2, %v2682_v7  ;;  %v2695_v10 = vsel %vm474_vm2, %v2295_v8, 0  ;;  %s2524_s30 = smov 10   ;;  %v2702_v11 = vld [vmem:[%s3386_s4 + $0x10] ss:$8 sps:$4 sm:$0xff]  }
  0x98   : > { %492 = vmatpush1.bf16.msra.mxu0 %v2695_v10  ;;  %v2708_v12 = vld [vmem:[%s3386_s4 + $0x4] ss:$8 sps:$4 sm:$0xff]   ;;  %v2525_v13 = vmov 0   ;;  %v2716_v14 = vld [vmem:[%s3386_s4] ss:$8 sps:$4 sm:$0xff]   ;;  %vm426_vm3 = vcmask 15360  }
  0x99   : > { %493 = vmatprep.subr.bf16.mxu0 %v2692_v9  ;;  %513 = vmatprep.mubr.bf16.mxu0 %v2525_v13  ;;  %v2720_v16 = vld [vmem:[#allocation4] sm:$0xf]  ;;  %vm428_vm4 = vcmask 80896   ;;  %vm470_vm5 = vcmask 343040   ;;  %v2726_v22 = vshrl.u32 %v432_v21, 7  ;;  %p644_p12 = scmp.lt.s32.totalorder %s2647_s26, 12 }
  0x9a   : > { %423 = vrot.lane.b32.xlu0 %v2676_v6, %s2524_s30  ;;  %v2732_v24 = vld [vmem:[%s3387_s5] sm:$0x3]  ;;  %s3399_s30 = smov 32   ;;  %v2758_v46 = vld [vmem:[%s3388_s6 + $0x8] sm:$0xff]   ;;  %s3397_s29 = smov 64   ;;  %v2528_v47 = vmov 0.0  }
  0x9b   : > { %2292 = vset.pattern.permute.xlu0 %v2525_v13  ;;  %v434_v23 = vsub.s32 0, %v2726_v22  ;;  %v415_v32 = vld [vmem:[#allocation3] sm:$0xf]  ;;  %s2747_s11 = scalar_select %p644_p12, 1, 0  ;;  %2160 = vmatprep.subr.bf16.mxu1 %v2528_v47  ;;  %vm2529_vm6 = vmmov 0  }
  0x9c   : > { %494 = vmatpush1.bf16.msra.mxu0 %v2702_v11  ;;  %2161 = vmatpush3.bf16.msra.mxu1 %v2758_v46  ;;  %v2766_v48 = vld [vmem:[%s3388_s6] sm:$0xff]   ;;  %vm579_vm7 = vcmask 261120   ;;  %s2531_s25 = smov 126   ;;  %v438_v5 = vsub.s32 1, %v2726_v22  ;;  %s825_s27 = sadd.s32 1, %s2647_s26  ;;  %vm642_vm8 = vcmask 273408  }
  0x9d   : > { %495 = vmatprep.subr.bf16.mxu0 %v2708_v12  ;;  %v2735_v25 = vrot.slane %v2732_v24, %v434_v23  ;;  %s646_s18 = scvt.s32.f32 %s2747_s11  ;;  %2164 = vmatprep.mubr.msk.bf16.mxu1 %vm2529_vm6, %v2528_v47  ;;  %v417_v53 = vld [vmem:[%s2661_s21] sm:$0xf]  ;;  %s3401_s11 = smov 74   ;;  %v2069_v1 = vld [vmem:[%s2656_s12 + $0x4] sm:$0xf]  ;;  %vm1891_vm9 = vcmask 257024  }
  0x9e   : > { %2162 = vmatprep.subr.bf16.mxu1 %v2528_v47  ;;  %v2809_v59 = vld [vmem:[%s3389_s7] ss:$0 sm:$0xff]  ;;  %p826_p13 = scmp.lt.s32.totalorder %s825_s27, 12  ;;  %vm1885_vm10 = vcmask 11264   ;;  %p2125_p9 = scmp.ne.s32.totalorder %s2616_s17, 1 }
  0x9f   : > { %s649_s19 = ssub.f32 1.0, %s646_s18  ;;  %v2787_v52 = vstv %s646_s18 }
  0xa0   : > { %496 = vmatpush1.bf16.msra.mxu0 %v2716_v14  ;;  %2163 = vmatpush3.bf16.msra.mxu1 %v2766_v48  ;;  %s827_s20 = scalar_select %p826_p13, 1, 0 }
  0xa1   : > { %v2750_v43 = vstv %s649_s19  ;;  %2168 = vmatprep.subr.bf16.mxu0 %v2528_v47  ;;  %2071 = vmatprep.subr.msk.bf16.mxu1 %vm474_vm2, %v2682_v7  ;;  %s999_s19 = sadd.s32 2, %s2647_s26 }
  0xa2   : > { %v654_v45 = vmul.f32 %v2750_v43, %v2676_v6  ;;  %v661_v57 = vmul.f32 %v2750_v43, %v415_v32  ;;  %v2817_v6 = vrot.slane %v2732_v24, %v438_v5  ;;  %v651_v22 = vmul.f32 %v2750_v43, %v2720_v16  ;;  %s828_s28 = scvt.s32.f32 %s827_s20  ;;  %p1000_p0 = scmp.lt.s32.totalorder %s999_s19, 12 }
  0xa4   : > { %s831_s18 = ssub.f32 1.0, %s828_s28 }
  0xa5   : > { %s1001_s27 = scalar_select %p1000_p0, 1, 0 }
  0xa7   : > { %s1002_s20 = scvt.s32.f32 %s1001_s27 }
 0x108   : > { %v420_v15 = vpop.permute.xlu0 %419 }
 0x109   : > { %v427_v17 = vsel %vm426_vm3, %v2720_v16, %v420_v15 }
 0x10c   : > { %v424_v18 = vpop.permute.xlu0 %423 }
 0x10d   : > { %v429_v19 = vsel %vm428_vm4, %v427_v17, %v424_v18 }
 0x10e   : > { %v430_v20 = vpack.c.bf16 %v429_v19, %v429_v19 }
 0x110   : > { %2062 = vmatmul.mubr.msk.bf16.vlgmr.msra.gmra.mxu0 %vm470_vm5, %v430_v20 }
 0x111   : > { %2169 = vmatpush3.bf16.msra.mxu0 %v2758_v46  ;;  %2172 = vmatprep.mubr.msk.bf16.mxu0 %vm2529_vm6, %v2528_v47 }
 0x112   : > { %2170 = vmatprep.subr.bf16.mxu0 %v2528_v47 }
 0x115   : > { %2171 = vmatpush3.bf16.msra.mxu0 %v2766_v48 }
 0x116   : > { %2079 = vmatprep.subr.msk.bf16.mxu0 %vm474_vm2, %v2682_v7 }
 0x1d0   : > { %v515_v26 = vpop.f32.mrf.mxu0 }
 0x1d1   : > { %v516_v27 = vadd.f32 %v515_v26, %v2735_v25 }
 0x1d2   : > { %v2738_v28 = vpop.f32.mrf.mxu0 }
 0x1d3   : > { %2304 = vtanh.f32 %v516_v27  ;;  %v2063_v33 = vmul.f32 -1.442695, %v516_v27  ;;  %v518_v15 = vadd.f32 %v2738_v28, %v2817_v6 }
 0x1d4   : > { %v519_v29 = vpop.f32.mrf.mxu0 }
 0x1d5   : > { %2306 = vpow2.f32 %v2063_v33 }
 0x1d6   : > { %v520_v30 = vpop.f32.mrf.mxu0 }
 0x1e0   : > { %v2305_v31 = vpop.eup %2304 }
 0x1e1   : > { %535 = vrot.lane.b32.xlu1 %v2305_v31, %s3399_s30 }
 0x1e2   : > { %v2307_v34 = vpop.eup %2306 }
 0x1e3   : > { %v525_v35 = vadd.f32 1.0, %v2307_v34 }
 0x1e5   : > { %530 = vrot.lane.b32.xlu1 %v415_v32, %s3399_s30  ;;  %2308 = vrcp.f32 %v525_v35 }
 0x1f2   : > { %v2309_v36 = vpop.eup %2308 }
 0x253   : > { %v536_v37 = vpop.permute.xlu1 %535 }
 0x254   : > { %v538_v38 = vmul.f32 %v2309_v36, %v536_v37 }
 0x256   : > { %540 = vrot.lane.b32.xlu0 %v538_v38, %s3399_s30 }
 0x257   : > { %v531_v39 = vpop.permute.xlu1 %530 }
 0x258   : > { %v533_v40 = vmul.f32 %v2309_v36, %v531_v39 }
 0x2c8   : > { %v541_v41 = vpop.permute.xlu0 %540 }
 0x2c9   : > { %v2744_v42 = vadd.f32 %v541_v41, %v533_v40 }
 0x2cb   : > { %2310 = vtanh.f32 %v2744_v42 }
 0x2d8   : > { %v2311_v44 = vpop.eup %2310 }
 0x2d9   : > { %546 = vrot.lane.b32.xlu1 %v2311_v44, %s3399_s30 }
 0x2dd   : > { %656 = vrot.lane.b32.xlu1 %v654_v45, %s3397_s29 }
 0x34b   : > { %v547_v49 = vpop.permute.xlu1 %546 }
 0x34c   : > { %v2782_v50 = vmul.f32 %v2309_v36, %v547_v49 }
 0x34e   : > { %v557_v51 = vpack.c.bf16 %v2782_v50, %v2782_v50  ;;  %v653_v54 = vmul.f32 %v2787_v52, %v2782_v50 }
 0x34f   : > { %v657_v55 = vpop.permute.xlu1 %656 }
 0x350   : > { %565 = vrot.lane.b32.xlu0 %v557_v51, %s3397_s29  ;;  %v2792_v56 = vadd.f32 %v657_v55, %v653_v54  ;;  %v660_v51 = vmul.f32 %v2787_v52, %v2744_v42 }
 0x354   : > { %552 = vperm.xlu0 %2292, %v417_v53  }
 0x358   : > { %676 = vrot.lane.b32.xlu0 %v2792_v56, %s3401_s11 }
 0x35c   : > { %663 = vrot.lane.b32.xlu0 %v661_v57, %s3399_s30 }
 0x3c2   : > { %v566_v58 = vpop.permute.xlu0 %565 }
 0x3c3   : > { %2165 = vmatmul.mubr.msk.bf16.vlgmr.msra.gmra.mxu1 %vm579_vm7, %v566_v58 }
 0x3c4   : > { %696 = vmatpush1.bf16.msra.mxu1 %v2695_v10  ;;  %717 = vmatprep.mubr.bf16.mxu1 %v2525_v13 }
 0x3c5   : > { %697 = vmatprep.subr.bf16.mxu1 %v2692_v9 }
 0x3c8   : > { %698 = vmatpush1.bf16.msra.mxu1 %v2702_v11 }
 0x3c9   : > { %699 = vmatprep.subr.bf16.mxu1 %v2708_v12 }
 0x3cc   : > { %700 = vmatpush1.bf16.msra.mxu1 %v2716_v14 }
 0x3cd   : > { %2176 = vmatprep.subr.bf16.mxu1 %v2528_v47 }
 0x3cf   : > { %v553_v8 = vpop.permute.xlu0 %552 }
 0x3d0   : > { %v555_v17 = vmul.f32 %v553_v8, %v518_v15 }
 0x3d2   : > { %v556_v19 = vadd.f32 %v555_v17, %v2720_v16 }
 0x3d3   : > { %v677_v28 = vpop.permute.xlu0 %676 }
 0x3d7   : > { %v664_v49 = vpop.permute.xlu0 %663 }
 0x3d8   : > { %v2848_v53 = vadd.f32 %v664_v49, %v660_v51 }
 0x483   : > { %v617_v60 = vpop.f32.mrf.mxu1 }
 0x484   : > { %v618_v61 = vadd.f32 %v2809_v59, %v617_v60  ;;  %v2070_v60 = vld [vmem:[%s2661_s21 + $0x4] sm:$0xf] }
 0x485   : > { %v2166_v62 = vpop.f32.mrf.mxu1 }
 0x486   : > { %v2068_v63 = vmul.f32 -1.442695, %v618_v61  ;;  %632 = vrot.lane.b32.xlu1 %v618_v61, %s2531_s25 }
 0x487   : > { %v620_v0 = vpop.f32.mrf.mxu1 }
 0x488   : > { %2312 = vpow2.f32 %v2068_v63  ;;  %v2077_v63 = vld [vmem:[%s2656_s12 + $0x8] sm:$0xf]  ;;  %v832_v0 = vstv %s831_s18  ;;  %s1173_s18 = sadd.s32 3, %s2647_s26 }
 0x489   : > { %v2167_v2 = vpop.f32.mrf.mxu1  ;;  %v836_v8 = vmul.f32 %v832_v0, %v2792_v56  ;;  %p1174_p1 = scmp.lt.s32.totalorder %s1173_s18, 12 }
 0x48a   : > { %672 = vrot.lane.b32.xlu1 %v2069_v1, %s2523_s15  ;;  %v829_v1 = vstv %s828_s28  ;;  %s1005_s28 = ssub.f32 1.0, %s1002_s20 }
 0x48b   : > { %s1175_s19 = scalar_select %p1174_p1, 1, 0 }
 0x48d   : > { %s1176_s27 = scvt.s32.f32 %s1175_s19 }
 0x495   : > { %v2313_v3 = vpop.eup %2312 }
 0x496   : > { %v626_v4 = vadd.f32 1.0, %v2313_v3 }
 0x498   : > { %2314 = vrcp.f32 %v626_v4 }
 0x4a5   : > { %v2315_v18 = vpop.eup %2314 }
 0x4a6   : > { %v629_v20 = vsub.f32 1.0, %v2315_v18 }
 0x4a8   : > { %v630_v21 = vmul.f32 %v629_v20, %v556_v19 }
 0x4f8   : > { %v633_v23 = vpop.permute.xlu1 %632 }
 0x4f9   : > { %v635_v26 = vmul.f32 %v2315_v18, %v633_v23 }
 0x4fb   : > { %v2822_v27 = vadd.f32 %v635_v26, %v630_v21 }
 0x4fc   : > { %v673_v29 = vpop.permute.xlu1 %672 }
 0x4fd   : > { %v648_v24 = vmul.f32 %v2787_v52, %v2822_v27 }
 0x4ff   : > { %v2828_v30 = vadd.f32 %v651_v22, %v648_v24 }
 0x501   : > { %v679_v31 = vsel %vm426_vm3, %v2828_v30, %v673_v29 }
 0x502   : > { %v680_v32 = vsel %vm428_vm4, %v679_v31, %v677_v28 }
 0x503   : > { %v681_v33 = vpack.c.bf16 %v680_v32, %v680_v32 }
 0x505   : > { %2072 = vmatmul.mubr.msk.bf16.vlgmr.msra.gmra.mxu1 %vm470_vm5, %v681_v33 }
 0x506   : > { %2177 = vmatpush3.bf16.msra.mxu1 %v2758_v46  ;;  %2180 = vmatprep.mubr.msk.bf16.mxu1 %vm2529_vm6, %v2528_v47 }
 0x507   : > { %2178 = vmatprep.subr.bf16.mxu1 %v2528_v47 }
 0x50a   : > { %2179 = vmatpush3.bf16.msra.mxu1 %v2766_v48 }
 0x50b   : > { %2087 = vmatprep.subr.msk.bf16.mxu1 %vm474_vm2, %v2682_v7 }
 0x5c5   : > { %v719_v16 = vpop.f32.mrf.mxu1 }
 0x5c6   : > { %v720_v34 = vadd.f32 %v719_v16, %v2735_v25 }
 0x5c7   : > { %v2842_v35 = vpop.f32.mrf.mxu1 }
 0x5c8   : > { %2316 = vtanh.f32 %v720_v34  ;;  %v2073_v39 = vmul.f32 -1.442695, %v720_v34  ;;  %v722_v26 = vadd.f32 %v2842_v35, %v2817_v6  ;;  %v833_v34 = vmul.f32 %v832_v0, %v2828_v30 }
 0x5c9   : > { %v723_v36 = vpop.f32.mrf.mxu1 }
 0x5ca   : > { %2318 = vpow2.f32 %v2073_v39 }
 0x5cb   : > { %v724_v37 = vpop.f32.mrf.mxu1 }
 0x5d5   : > { %v2317_v38 = vpop.eup %2316 }
 0x5d6   : > { %735 = vrot.lane.b32.xlu1 %v2317_v38, %s3399_s30 }
 0x5d7   : > { %v2319_v40 = vpop.eup %2318 }
 0x5d8   : > { %v729_v41 = vadd.f32 1.0, %v2319_v40 }
 0x5da   : > { %2320 = vrcp.f32 %v729_v41 }
 0x5e7   : > { %v2321_v43 = vpop.eup %2320 }
 0x5e8   : > { %v733_v54 = vmul.f32 %v2321_v43, %v2848_v53 }
 0x648   : > { %v736_v44 = vpop.permute.xlu1 %735 }
 0x649   : > { %v738_v45 = vmul.f32 %v2321_v43, %v736_v44 }
 0x64b   : > { %740 = vrot.lane.b32.xlu1 %v738_v45, %s3399_s30 }
 0x6bd   : > { %v741_v55 = vpop.permute.xlu1 %740 }
 0x6be   : > { %v2851_v57 = vadd.f32 %v741_v55, %v733_v54 }
 0x6c0   : > { %2322 = vtanh.f32 %v2851_v57 }
 0x6cd   : > { %v2323_v58 = vpop.eup %2322 }
 0x6ce   : > { %746 = vrot.lane.b32.xlu0 %v2323_v58, %s3399_s30 }
 0x6d2   : > { %752 = vperm.xlu0 %2292, %v2070_v60  }
 0x6d6   : > { %846 = vrot.lane.b32.xlu0 %v2077_v63, %s2523_s15 }
 0x740   : > { %v747_v61 = vpop.permute.xlu0 %746 }
 0x741   : > { %v2856_v62 = vmul.f32 %v2321_v43, %v747_v61 }
 0x743   : > { %v757_v42 = vpack.c.bf16 %v2856_v62, %v2856_v62  ;;  %v835_v3 = vmul.f32 %v829_v1, %v2856_v62 }
 0x745   : > { %759 = vrot.lane.b32.xlu1 %v757_v42, %s3397_s29  ;;  %v2876_v18 = vadd.f32 %v836_v8, %v835_v3  ;;  %v838_v42 = vmul.f32 %v829_v1, %v2851_v57  ;;  %v2078_v8 = vld [vmem:[%s2661_s21 + $0x8] sm:$0xf] }
 0x74d   : > { %v753_v23 = vpop.permute.xlu0 %752 }
 0x74e   : > { %v755_v22 = vmul.f32 %v753_v23, %v722_v26  ;;  %v1006_v26 = vstv %s1005_s28  ;;  %s1347_s28 = sadd.s32 4, %s2647_s26 }
 0x74f   : > { %p1348_p3 = scmp.lt.s32.totalorder %s1347_s28, 12 }
 0x750   : > { %v756_v24 = vadd.f32 %v755_v22, %v2828_v30 }
 0x751   : > { %v847_v36 = vpop.permute.xlu0 %846  ;;  %s1349_s18 = scalar_select %p1348_p3, 1, 0 }
 0x753   : > { %s1350_s19 = scvt.s32.f32 %s1349_s18 }
 0x7b7   : > { %v760_v52 = vpop.permute.xlu1 %759 }
 0x7b8   : > { %2173 = vmatmul.mubr.msk.bf16.vlgmr.msra.gmra.mxu0 %vm579_vm7, %v760_v52  ;;  %v839_v52 = vmul.f32 %v832_v0, %v2848_v53 }
 0x7b9   : > { %870 = vmatpush1.bf16.msra.mxu0 %v2695_v10  ;;  %891 = vmatprep.mubr.bf16.mxu0 %v2525_v13 }
 0x7ba   : > { %871 = vmatprep.subr.bf16.mxu0 %v2692_v9  ;;  %v2907_v63 = vadd.f32 %v839_v52, %v838_v42 }
 0x7bd   : > { %872 = vmatpush1.bf16.msra.mxu0 %v2702_v11 }
 0x7be   : > { %873 = vmatprep.subr.bf16.mxu0 %v2708_v12 }
 0x7c1   : > { %874 = vmatpush1.bf16.msra.mxu0 %v2716_v14 }
 0x7c2   : > { %2184 = vmatprep.subr.bf16.mxu0 %v2528_v47 }
 0x878   : > { %v798_v2 = vpop.f32.mrf.mxu0 }
 0x879   : > { %v799_v4 = vadd.f32 %v2809_v59, %v798_v2 }
 0x87a   : > { %v2174_v5 = vpop.f32.mrf.mxu0 }
 0x87b   : > { %v2075_v15 = vmul.f32 -1.442695, %v799_v4  ;;  %813 = vrot.lane.b32.xlu1 %v799_v4, %s2531_s25 }
 0x87c   : > { %v801_v17 = vpop.f32.mrf.mxu0 }
 0x87d   : > { %2324 = vpow2.f32 %v2075_v15  ;;  %v1003_v17 = vstv %s1002_s20  ;;  %s1179_s20 = ssub.f32 1.0, %s1176_s27 }
 0x87e   : > { %v2175_v19 = vpop.f32.mrf.mxu0 }
 0x87f   : > { %850 = vrot.lane.b32.xlu1 %v2876_v18, %s3401_s11 }
 0x88a   : > { %v2325_v20 = vpop.eup %2324 }
 0x88b   : > { %v807_v21 = vadd.f32 1.0, %v2325_v20 }
 0x88d   : > { %2326 = vrcp.f32 %v807_v21 }
 0x89a   : > { %v2327_v56 = vpop.eup %2326 }
 0x89b   : > { %v810_v29 = vsub.f32 1.0, %v2327_v56 }
 0x89d   : > { %v811_v28 = vmul.f32 %v810_v29, %v756_v24 }
 0x8ed   : > { %v814_v31 = vpop.permute.xlu1 %813 }
 0x8ee   : > { %v816_v32 = vmul.f32 %v2327_v56, %v814_v31  ;;  %v1010_v56 = vmul.f32 %v1006_v26, %v2876_v18 }
 0x8f0   : > { %v2883_v33 = vadd.f32 %v816_v32, %v811_v28 }
 0x8f1   : > { %v851_v38 = vpop.permute.xlu1 %850 }
 0x8f2   : > { %v830_v16 = vmul.f32 %v829_v1, %v2883_v33  ;;  %v2085_v1 = vld [vmem:[%s2656_s12 + $0xc] sm:$0xf] }
 0x8f4   : > { %v2887_v37 = vadd.f32 %v833_v34, %v830_v16 }
 0x8f6   : > { %v853_v35 = vsel %vm426_vm3, %v2887_v37, %v847_v36 }
 0x8f7   : > { %v854_v39 = vsel %vm428_vm4, %v853_v35, %v851_v38 }
 0x8f8   : > { %v855_v40 = vpack.c.bf16 %v854_v39, %v854_v39 }
 0x8fa   : > { %2080 = vmatmul.mubr.msk.bf16.vlgmr.msra.gmra.mxu0 %vm470_vm5, %v855_v40 }
 0x8fb   : > { %2185 = vmatpush3.bf16.msra.mxu0 %v2758_v46  ;;  %2188 = vmatprep.mubr.msk.bf16.mxu0 %vm2529_vm6, %v2528_v47 }
 0x8fc   : > { %2186 = vmatprep.subr.bf16.mxu0 %v2528_v47 }
 0x8ff   : > { %2187 = vmatpush3.bf16.msra.mxu0 %v2766_v48 }
 0x900   : > { %2095 = vmatprep.subr.msk.bf16.mxu0 %vm474_vm2, %v2682_v7 }
 0x9ba   : > { %v893_v30 = vpop.f32.mrf.mxu0 }
 0x9bb   : > { %v894_v41 = vadd.f32 %v893_v30, %v2735_v25 }
 0x9bc   : > { %v2901_v43 = vpop.f32.mrf.mxu0 }
 0x9bd   : > { %2328 = vtanh.f32 %v894_v41  ;;  %v2081_v51 = vmul.f32 -1.442695, %v894_v41  ;;  %v896_v34 = vadd.f32 %v2901_v43, %v2817_v6 }
 0x9be   : > { %v897_v44 = vpop.f32.mrf.mxu0 }
 0x9bf   : > { %2330 = vpow2.f32 %v2081_v51 }
 0x9c0   : > { %v898_v45 = vpop.f32.mrf.mxu0 }
 0x9c1   : > { %v1007_v45 = vmul.f32 %v1006_v26, %v2887_v37 }
 0x9ca   : > { %v2329_v49 = vpop.eup %2328 }
 0x9cb   : > { %909 = vrot.lane.b32.xlu0 %v2329_v49, %s3399_s30 }
 0x9cc   : > { %v2331_v54 = vpop.eup %2330 }
 0x9cd   : > { %v903_v55 = vadd.f32 1.0, %v2331_v54 }
 0x9cf   : > { %2332 = vrcp.f32 %v903_v55 }
 0x9dc   : > { %v2333_v58 = vpop.eup %2332 }
 0x9dd   : > { %v907_v2 = vmul.f32 %v2333_v58, %v2907_v63 }
 0xa3d   : > { %v910_v60 = vpop.permute.xlu0 %909 }
 0xa3e   : > { %v912_v61 = vmul.f32 %v2333_v58, %v910_v60 }
 0xa40   : > { %914 = vrot.lane.b32.xlu1 %v912_v61, %s3399_s30 }
 0xab2   : > { %v915_v3 = vpop.permute.xlu1 %914 }
 0xab3   : > { %v2910_v4 = vadd.f32 %v915_v3, %v907_v2 }
 0xab5   : > { %2334 = vtanh.f32 %v2910_v4 }
 0xac2   : > { %v2335_v5 = vpop.eup %2334 }
 0xac3   : > { %920 = vrot.lane.b32.xlu0 %v2335_v5, %s3399_s30 }
 0xac7   : > { %926 = vperm.xlu0 %2292, %v2078_v8  }
 0xacb   : > { %1020 = vrot.lane.b32.xlu0 %v2085_v1, %s2523_s15  ;;  %v1012_v1 = vmul.f32 %v1003_v17, %v2910_v4 }
 0xb35   : > { %v921_v15 = vpop.permute.xlu0 %920 }
 0xb36   : > { %v2915_v57 = vmul.f32 %v2333_v58, %v921_v15 }
 0xb38   : > { %v931_v53 = vpack.c.bf16 %v2915_v57, %v2915_v57  ;;  %v1009_v20 = vmul.f32 %v1003_v17, %v2915_v57 }
 0xb3a   : > { %933 = vrot.lane.b32.xlu1 %v931_v53, %s3397_s29  ;;  %v2935_v29 = vadd.f32 %v1010_v56, %v1009_v20 }
 0xb42   : > { %v927_v16 = vpop.permute.xlu0 %926 }
 0xb43   : > { %v929_v36 = vmul.f32 %v927_v16, %v896_v34 }
 0xb45   : > { %v930_v35 = vadd.f32 %v929_v36, %v2887_v37 }
 0xb46   : > { %v1021_v49 = vpop.permute.xlu0 %1020 }
 0xbac   : > { %v934_v0 = vpop.permute.xlu1 %933 }
 0xbad   : > { %2181 = vmatmul.mubr.msk.bf16.vlgmr.msra.gmra.mxu1 %vm579_vm7, %v934_v0 }
 0xbae   : > { %1044 = vmatpush1.bf16.msra.mxu1 %v2695_v10  ;;  %1065 = vmatprep.mubr.bf16.mxu1 %v2525_v13 }
 0xbaf   : > { %1045 = vmatprep.subr.bf16.mxu1 %v2692_v9 }
 0xbb2   : > { %1046 = vmatpush1.bf16.msra.mxu1 %v2702_v11 }
 0xbb3   : > { %1047 = vmatprep.subr.bf16.mxu1 %v2708_v12 }
 0xbb6   : > { %1048 = vmatpush1.bf16.msra.mxu1 %v2716_v14 }
 0xbb7   : > { %2192 = vmatprep.subr.bf16.mxu1 %v2528_v47 }
 0xc6d   : > { %v972_v19 = vpop.f32.mrf.mxu1 }
 0xc6e   : > { %v973_v21 = vadd.f32 %v2809_v59, %v972_v19  ;;  %v1013_v19 = vmul.f32 %v1006_v26, %v2907_v63  ;;  %v2093_v26 = vld [vmem:[%s2656_s12 + $0x10] sm:$0xf] }
 0xc6f   : > { %v2182_v23 = vpop.f32.mrf.mxu1 }
 0xc70   : > { %v2083_v22 = vmul.f32 -1.442695, %v973_v21  ;;  %987 = vrot.lane.b32.xlu1 %v973_v21, %s2531_s25  ;;  %v2966_v20 = vadd.f32 %v1013_v19, %v1012_v1 }
 0xc71   : > { %v975_v24 = vpop.f32.mrf.mxu1 }
 0xc72   : > { %2336 = vpow2.f32 %v2083_v22  ;;  %v2086_v24 = vld [vmem:[%s2661_s21 + $0xc] sm:$0xf] }
 0xc73   : > { %v2183_v28 = vpop.f32.mrf.mxu1 }
 0xc74   : > { %1024 = vrot.lane.b32.xlu1 %v2935_v29, %s3401_s11 }
 0xc7f   : > { %v2337_v31 = vpop.eup %2336 }
 0xc80   : > { %v981_v32 = vadd.f32 1.0, %v2337_v31  ;;  %v1177_v31 = vstv %s1176_s27  ;;  %s1353_s27 = ssub.f32 1.0, %s1350_s19 }
 0xc82   : > { %2338 = vrcp.f32 %v981_v32 }
 0xc8f   : > { %v2339_v38 = vpop.eup %2338 }
 0xc90   : > { %v984_v18 = vsub.f32 1.0, %v2339_v38 }
 0xc92   : > { %v985_v39 = vmul.f32 %v984_v18, %v930_v35 }
 0xce2   : > { %v988_v40 = vpop.permute.xlu1 %987 }
 0xce3   : > { %v990_v30 = vmul.f32 %v2339_v38, %v988_v40  ;;  %v1180_v38 = vstv %s1179_s20 }
 0xce4   : > { %v1184_v18 = vmul.f32 %v1180_v38, %v2935_v29 }
 0xce5   : > { %v2942_v41 = vadd.f32 %v990_v30, %v985_v39 }
 0xce6   : > { %v1025_v54 = vpop.permute.xlu1 %1024 }
 0xce7   : > { %v1004_v44 = vmul.f32 %v1003_v17, %v2942_v41 }
 0xce9   : > { %v2946_v51 = vadd.f32 %v1007_v45, %v1004_v44 }
 0xceb   : > { %v1027_v43 = vsel %vm426_vm3, %v2946_v51, %v1021_v49 }
 0xcec   : > { %v1028_v55 = vsel %vm428_vm4, %v1027_v43, %v1025_v54 }
 0xced   : > { %v1029_v58 = vpack.c.bf16 %v1028_v55, %v1028_v55 }
 0xcef   : > { %2088 = vmatmul.mubr.msk.bf16.vlgmr.msra.gmra.mxu1 %vm470_vm5, %v1029_v58 }
 0xcf0   : > { %2193 = vmatpush3.bf16.msra.mxu1 %v2758_v46  ;;  %2196 = vmatprep.mubr.msk.bf16.mxu1 %vm2529_vm6, %v2528_v47 }
 0xcf1   : > { %2194 = vmatprep.subr.bf16.mxu1 %v2528_v47 }
 0xcf4   : > { %2195 = vmatpush3.bf16.msra.mxu1 %v2766_v48 }
 0xcf5   : > { %2103 = vmatprep.subr.msk.bf16.mxu1 %vm474_vm2, %v2682_v7 }
 0xdaf   : > { %v1067_v37 = vpop.f32.mrf.mxu1 }
 0xdb0   : > { %v1068_v60 = vadd.f32 %v1067_v37, %v2735_v25 }
 0xdb1   : > { %v2960_v61 = vpop.f32.mrf.mxu1 }
 0xdb2   : > { %2340 = vtanh.f32 %v1068_v60  ;;  %v2089_v3 = vmul.f32 -1.442695, %v1068_v60  ;;  %v1070_v54 = vadd.f32 %v2960_v61, %v2817_v6 }
 0xdb3   : > { %v1071_v42 = vpop.f32.mrf.mxu1 }
 0xdb4   : > { %2342 = vpow2.f32 %v2089_v3  ;;  %v1181_v3 = vmul.f32 %v1180_v38, %v2946_v51 }
 0xdb5   : > { %v1072_v52 = vpop.f32.mrf.mxu1 }
 0xdbf   : > { %v2341_v2 = vpop.eup %2340 }
 0xdc0   : > { %1083 = vrot.lane.b32.xlu0 %v2341_v2, %s3399_s30 }
 0xdc1   : > { %v2343_v5 = vpop.eup %2342 }
 0xdc2   : > { %v1077_v8 = vadd.f32 1.0, %v2343_v5 }
 0xdc4   : > { %2344 = vrcp.f32 %v1077_v8 }
 0xdd1   : > { %v2345_v15 = vpop.eup %2344 }
 0xdd2   : > { %v1081_v21 = vmul.f32 %v2345_v15, %v2966_v20 }
 0xe32   : > { %v1084_v53 = vpop.permute.xlu0 %1083 }
 0xe33   : > { %v1086_v0 = vmul.f32 %v2345_v15, %v1084_v53 }
 0xe35   : > { %1088 = vrot.lane.b32.xlu1 %v1086_v0, %s3399_s30 }
 0xea7   : > { %v1089_v23 = vpop.permute.xlu1 %1088 }
 0xea8   : > { %v2969_v22 = vadd.f32 %v1089_v23, %v1081_v21 }
 0xeaa   : > { %2346 = vtanh.f32 %v2969_v22 }
 0xeb7   : > { %v2347_v56 = vpop.eup %2346 }
 0xeb8   : > { %1094 = vrot.lane.b32.xlu0 %v2347_v56, %s3399_s30 }
 0xebc   : > { %1100 = vperm.xlu0 %2292, %v2086_v24  }
 0xec0   : > { %1194 = vrot.lane.b32.xlu0 %v2093_v26, %s2523_s15 }
 0xf2a   : > { %v1095_v28 = vpop.permute.xlu0 %1094 }
 0xf2b   : > { %v2974_v4 = vmul.f32 %v2345_v15, %v1095_v28 }
 0xf2d   : > { %v1105_v63 = vpack.c.bf16 %v2974_v4, %v2974_v4  ;;  %v1183_v16 = vmul.f32 %v1177_v31, %v2974_v4 }
 0xf2f   : > { %1107 = vrot.lane.b32.xlu1 %v1105_v63, %s3397_s29  ;;  %v2994_v40 = vadd.f32 %v1184_v18, %v1183_v16  ;;  %v1187_v16 = vmul.f32 %v1180_v38, %v2966_v20  ;;  %v2101_v38 = vld [vmem:[%s2656_s12 + $0x14] sm:$0xf] }
 0xf37   : > { %v1101_v49 = vpop.permute.xlu0 %1100 }
 0xf38   : > { %v1103_v43 = vmul.f32 %v1101_v49, %v1070_v54 }
 0xf3a   : > { %v1104_v58 = vadd.f32 %v1103_v43, %v2946_v51 }
 0xf3b   : > { %v1195_v5 = vpop.permute.xlu0 %1194 }
 0xfa1   : > { %v1108_v17 = vpop.permute.xlu1 %1107 }
 0xfa2   : > { %2189 = vmatmul.mubr.msk.bf16.vlgmr.msra.gmra.mxu0 %vm579_vm7, %v1108_v17 }
 0xfa3   : > { %1218 = vmatpush1.bf16.msra.mxu0 %v2695_v10  ;;  %1239 = vmatprep.mubr.bf16.mxu0 %v2525_v13 }
 0xfa4   : > { %1219 = vmatprep.subr.bf16.mxu0 %v2692_v9 }
 0xfa7   : > { %1220 = vmatpush1.bf16.msra.mxu0 %v2702_v11 }
 0xfa8   : > { %1221 = vmatprep.subr.bf16.mxu0 %v2708_v12 }
 0xfab   : > { %1222 = vmatpush1.bf16.msra.mxu0 %v2716_v14 }
 0xfac   : > { %2200 = vmatprep.subr.bf16.mxu0 %v2528_v47 }
0x1062   : > { %v1146_v32 = vpop.f32.mrf.mxu0 }
0x1063   : > { %v1147_v34 = vadd.f32 %v2809_v59, %v1146_v32  ;;  %v1186_v32 = vmul.f32 %v1177_v31, %v2969_v22 }
0x1064   : > { %v2190_v36 = vpop.f32.mrf.mxu0 }
0x1065   : > { %v2091_v35 = vmul.f32 -1.442695, %v1147_v34  ;;  %1161 = vrot.lane.b32.xlu1 %v1147_v34, %s2531_s25  ;;  %v3025_v34 = vadd.f32 %v1187_v16, %v1186_v32 }
0x1066   : > { %v1149_v39 = vpop.f32.mrf.mxu0 }
0x1067   : > { %2348 = vpow2.f32 %v2091_v35 }
0x1068   : > { %v2191_v30 = vpop.f32.mrf.mxu0 }
0x1069   : > { %1198 = vrot.lane.b32.xlu1 %v2994_v40, %s3401_s11  ;;  %v2094_v30 = vld [vmem:[%s2661_s21 + $0x10] sm:$0xf] }
0x1074   : > { %v2349_v44 = vpop.eup %2348 }
0x1075   : > { %v1155_v45 = vadd.f32 1.0, %v2349_v44 }
0x1077   : > { %2350 = vrcp.f32 %v1155_v45  ;;  %v1351_v45 = vstv %s1350_s19  ;;  %s1521_s19 = sadd.s32 5, %s2647_s26 }
0x1078   : > { %p1522_p4 = scmp.lt.s32.totalorder %s1521_s19, 12 }
0x1084   : > { %v2351_v55 = vpop.eup %2350 }
0x1085   : > { %v1158_v29 = vsub.f32 1.0, %v2351_v55 }
0x1087   : > { %v1159_v37 = vmul.f32 %v1158_v29, %v1104_v58 }
0x10d7   : > { %v1162_v60 = vpop.permute.xlu1 %1161 }
0x10d8   : > { %v1164_v42 = vmul.f32 %v2351_v55, %v1162_v60 }
0x10da   : > { %v3001_v52 = vadd.f32 %v1164_v42, %v1159_v37 }
0x10db   : > { %v1199_v15 = vpop.permute.xlu1 %1198 }
0x10dc   : > { %v1178_v2 = vmul.f32 %v1177_v31, %v3001_v52 }
0x10de   : > { %v3005_v8 = vadd.f32 %v1181_v3, %v1178_v2 }
0x10e0   : > { %v1201_v61 = vsel %vm426_vm3, %v3005_v8, %v1195_v5 }
0x10e1   : > { %v1202_v53 = vsel %vm428_vm4, %v1201_v61, %v1199_v15 }
0x10e2   : > { %v1203_v0 = vpack.c.bf16 %v1202_v53, %v1202_v53 }
0x10e4   : > { %2096 = vmatmul.mubr.msk.bf16.vlgmr.msra.gmra.mxu0 %vm470_vm5, %v1203_v0 }
0x10e5   : > { %2201 = vmatpush3.bf16.msra.mxu0 %v2758_v46  ;;  %2204 = vmatprep.mubr.msk.bf16.mxu0 %vm2529_vm6, %v2528_v47 }
0x10e6   : > { %2202 = vmatprep.subr.bf16.mxu0 %v2528_v47 }
0x10e9   : > { %2203 = vmatpush3.bf16.msra.mxu0 %v2766_v48 }
0x10ea   : > { %2111 = vmatprep.subr.msk.bf16.mxu0 %vm474_vm2, %v2682_v7 }
0x11a4   : > { %v1241_v51 = vpop.f32.mrf.mxu0 }
0x11a5   : > { %v1242_v1 = vadd.f32 %v1241_v51, %v2735_v25 }
0x11a6   : > { %v3019_v19 = vpop.f32.mrf.mxu0 }
0x11a7   : > { %2352 = vtanh.f32 %v1242_v1  ;;  %v2097_v24 = vmul.f32 -1.442695, %v1242_v1  ;;  %v1244_v2 = vadd.f32 %v3019_v19, %v2817_v6 }
0x11a8   : > { %v1245_v21 = vpop.f32.mrf.mxu0 }
0x11a9   : > { %2354 = vpow2.f32 %v2097_v24 }
0x11aa   : > { %v1246_v23 = vpop.f32.mrf.mxu0 }
0x11b4   : > { %v2353_v56 = vpop.eup %2352 }
0x11b5   : > { %1257 = vrot.lane.b32.xlu0 %v2353_v56, %s3399_s30 }
0x11b6   : > { %v2355_v28 = vpop.eup %2354 }
0x11b7   : > { %v1251_v63 = vadd.f32 1.0, %v2355_v28 }
0x11b9   : > { %2356 = vrcp.f32 %v1251_v63 }
0x11c6   : > { %v2357_v17 = vpop.eup %2356 }
0x11c7   : > { %v1255_v36 = vmul.f32 %v2357_v17, %v3025_v34 }
0x1227   : > { %v1258_v26 = vpop.permute.xlu0 %1257 }
0x1228   : > { %v1260_v7 = vmul.f32 %v2357_v17, %v1258_v26 }
0x122a   : > { %1262 = vrot.lane.b32.xlu1 %v1260_v7, %s3399_s30 }
0x129c   : > { %v1263_v35 = vpop.permute.xlu1 %1262 }
0x129d   : > { %v3028_v18 = vadd.f32 %v1263_v35, %v1255_v36 }
0x129f   : > { %2358 = vtanh.f32 %v3028_v18 }
0x12ac   : > { %v2359_v39 = vpop.eup %2358 }
0x12ad   : > { %1268 = vrot.lane.b32.xlu0 %v2359_v39, %s3399_s30 }
0x12b1   : > { %1274 = vperm.xlu0 %2292, %v2094_v30  }
0x12b5   : > { %1368 = vrot.lane.b32.xlu0 %v2101_v38, %s2523_s15 }
0x131f   : > { %v1269_v44 = vpop.permute.xlu0 %1268 }
0x1320   : > { %v3033_v22 = vmul.f32 %v2357_v17, %v1269_v44 }
0x1322   : > { %v1279_v20 = vpack.c.bf16 %v3033_v22, %v3033_v22 }
0x1324   : > { %1281 = vrot.lane.b32.xlu1 %v1279_v20, %s3397_s29  ;;  %v1360_v20 = vmul.f32 %v1351_v45, %v3028_v18 }
0x132c   : > { %v1275_v42 = vpop.permute.xlu0 %1274 }
0x132d   : > { %v1277_v3 = vmul.f32 %v1275_v42, %v1244_v2 }
0x132f   : > { %v1278_v15 = vadd.f32 %v1277_v3, %v3005_v8 }
0x1330   : > { %v1369_v23 = vpop.permute.xlu0 %1368 }
0x1396   : > { %v1282_v31 = vpop.permute.xlu1 %1281 }
0x1397   : > { %2197 = vmatmul.mubr.msk.bf16.vlgmr.msra.gmra.mxu1 %vm579_vm7, %v1282_v31 }
0x1398   : > { %1392 = vmatpush1.bf16.msra.mxu1 %v2695_v10  ;;  %1413 = vmatprep.mubr.bf16.mxu1 %v2525_v13 }
0x1399   : > { %1393 = vmatprep.subr.bf16.mxu1 %v2692_v9  ;;  %v1357_v9 = vmul.f32 %v1351_v45, %v3033_v22 }
0x139c   : > { %1394 = vmatpush1.bf16.msra.mxu1 %v2702_v11 }
0x139d   : > { %1395 = vmatprep.subr.bf16.mxu1 %v2708_v12  ;;  %v1354_v12 = vstv %s1353_s27  ;;  %s1523_s27 = scalar_select %p1522_p4, 1, 0 }
0x139e   : > { %v1355_v21 = vmul.f32 %v1354_v12, %v3005_v8  ;;  %v2400_v8 = vld [vmem:[%s3386_s4 + $0x24] ss:$8 sps:$4 sm:$0x1f]   ;;  %v1361_v31 = vmul.f32 %v1354_v12, %v3025_v34 }
0x13a0   : > { %1396 = vmatpush1.bf16.msra.mxu1 %v2716_v14  ;;  %v1358_v14 = vmul.f32 %v1354_v12, %v2994_v40  ;;  %v3086_v38 = vadd.f32 %v1361_v31, %v1360_v20  ;;  %v3111_v12 = vld [vmem:[%s3386_s4 + $0x10] ss:$8 sps:$4 sm:$0xff]   ;;  %v2405_v20 = vld [vmem:[%s3388_s6 + $0x8] sm:$0xff]  }
0x13a1   : > { %2208 = vmatprep.subr.bf16.mxu1 %v2528_v47 }
0x13a2   : > { %v3053_v58 = vadd.f32 %v1358_v14, %v1357_v9 }
0x1457   : > { %v1320_v49 = vpop.f32.mrf.mxu1 }
0x1458   : > { %v1321_v11 = vadd.f32 %v2809_v59, %v1320_v49 }
0x1459   : > { %v2198_v54 = vpop.f32.mrf.mxu1 }
0x145a   : > { %v2099_v43 = vmul.f32 -1.442695, %v1321_v11  ;;  %1335 = vrot.lane.b32.xlu1 %v1321_v11, %s2531_s25 }
0x145b   : > { %v1323_v55 = vpop.f32.mrf.mxu1 }
0x145c   : > { %2360 = vpow2.f32 %v2099_v43  ;;  %v2102_v43 = vld [vmem:[%s2661_s21 + $0x14] sm:$0xf] }
0x145d   : > { %v2199_v29 = vpop.f32.mrf.mxu1 }
0x145e   : > { %1372 = vrot.lane.b32.xlu1 %v3053_v58, %s3401_s11  ;;  %v3117_v29 = vld [vmem:[%s3386_s4 + $0x4] ss:$8 sps:$4 sm:$0xff]  }
0x1469   : > { %v2361_v37 = vpop.eup %2360 }
0x146a   : > { %v1329_v60 = vadd.f32 1.0, %v2361_v37  ;;  %v3123_v37 = vld [vmem:[%s3386_s4] ss:$8 sps:$4 sm:$0xff]  }
0x146c   : > { %2362 = vrcp.f32 %v1329_v60  ;;  %v2109_v60 = vld [vmem:[%s2656_s12 + $0x18] sm:$0xf] }
0x1479   : > { %v2363_v5 = vpop.eup %2362 }
0x147a   : > { %v1332_v40 = vsub.f32 1.0, %v2363_v5 }
0x147c   : > { %v1333_v61 = vmul.f32 %v1332_v40, %v1278_v15 }
0x14cc   : > { %v1336_v53 = vpop.permute.xlu1 %1335 }
0x14cd   : > { %v1338_v0 = vmul.f32 %v2363_v5, %v1336_v53 }
0x14cf   : > { %v3060_v51 = vadd.f32 %v1338_v0, %v1333_v61 }
0x14d0   : > { %v1373_v24 = vpop.permute.xlu1 %1372 }
0x14d1   : > { %v1352_v1 = vmul.f32 %v1351_v45, %v3060_v51  ;;  %v3105_v45 = vld [vmem:[%s3386_s4 + $0x14] ss:$8 sps:$4 sm:$0xff]  }
0x14d3   : > { %v3064_v56 = vadd.f32 %v1355_v21, %v1352_v1 }
0x14d5   : > { %v1375_v19 = vsel %vm426_vm3, %v3064_v56, %v1369_v23 }
0x14d6   : > { %v1376_v28 = vsel %vm428_vm4, %v1375_v19, %v1373_v24 }
0x14d7   : > { %v1377_v63 = vpack.c.bf16 %v1376_v28, %v1376_v28 }
0x14d9   : > { %2104 = vmatmul.mubr.msk.bf16.vlgmr.msra.gmra.mxu1 %vm470_vm5, %v1377_v63 }
0x14da   : > { %2209 = vmatpush3.bf16.msra.mxu1 %v2758_v46  ;;  %2212 = vmatprep.mubr.msk.bf16.mxu1 %vm2529_vm6, %v2528_v47 }
0x14db   : > { %2210 = vmatprep.subr.bf16.mxu1 %v2528_v47 }
0x14de   : > { %2211 = vmatpush3.bf16.msra.mxu1 %v2766_v48 }
0x14df   : > { %2119 = vmatprep.subr.msk.bf16.mxu1 %vm474_vm2, %v2400_v8 }
0x1599   : > { %v1415_v17 = vpop.f32.mrf.mxu1 }
0x159a   : > { %v1416_v26 = vadd.f32 %v1415_v17, %v2735_v25 }
0x159b   : > { %v3080_v7 = vpop.f32.mrf.mxu1 }
0x159c   : > { %2364 = vtanh.f32 %v1416_v26  ;;  %v2105_v36 = vmul.f32 -1.442695, %v1416_v26 }
0x159d   : > { %v1419_v46 = vpop.f32.mrf.mxu1 }
0x159e   : > { %2366 = vpow2.f32 %v2105_v36 }
0x159f   : > { %v1420_v32 = vpop.f32.mrf.mxu1 }
0x15a9   : > { %v2365_v16 = vpop.eup %2364 }
0x15aa   : > { %1431 = vrot.lane.b32.xlu0 %v2365_v16, %s3399_s30 }
0x15ab   : > { %v2367_v48 = vpop.eup %2366 }
0x15ac   : > { %v1425_v35 = vadd.f32 1.0, %v2367_v48 }
0x15ae   : > { %2368 = vrcp.f32 %v1425_v35 }
0x15bb   : > { %v2369_v39 = vpop.eup %2368 }
0x15bc   : > { %v1429_v49 = vmul.f32 %v2369_v39, %v3086_v38 }
0x161c   : > { %v1432_v30 = vpop.permute.xlu0 %1431 }
0x161d   : > { %v1434_v44 = vmul.f32 %v2369_v39, %v1432_v30 }
0x161f   : > { %1436 = vrot.lane.b32.xlu1 %v1434_v44, %s3399_s30 }
0x1691   : > { %v1437_v9 = vpop.permute.xlu1 %1436 }
0x1692   : > { %v3089_v11 = vadd.f32 %v1437_v9, %v1429_v49 }
0x1694   : > { %2370 = vtanh.f32 %v3089_v11 }
0x16a1   : > { %v2371_v54 = vpop.eup %2370 }
0x16a2   : > { %1442 = vrot.lane.b32.xlu0 %v2371_v54, %s3399_s30 }
0x16a6   : > { %1448 = vperm.xlu0 %2292, %v2102_v43  }
0x16aa   : > { %1542 = vrot.lane.b32.xlu0 %v2109_v60, %s2523_s15 }
0x1714   : > { %v1443_v14 = vpop.permute.xlu0 %1442 }
0x1715   : > { %v3094_v55 = vmul.f32 %v2369_v39, %v1443_v14 }
0x1717   : > { %v1453_v34 = vpack.c.bf16 %v3094_v55, %v3094_v55 }
0x1719   : > { %1455 = vrot.lane.b32.xlu1 %v1453_v34, %s3397_s29  ;;  %s1524_s29 = scvt.s32.f32 %s1523_s27  ;;  %s3407_s27 = smov 32  }
0x171b   : > { %s1527_s20 = ssub.f32 1.0, %s1524_s29  ;;  %v1525_v42 = vstv %s1524_s29  ;;  %s3408_s29 = smov 64  }
0x171c   : > { %v1531_v3 = vmul.f32 %v1525_v42, %v3094_v55 }
0x171d   : > { %v1528_v40 = vstv %s1527_s20  ;;  %s1695_s20 = sadd.s32 6, %s2647_s26 }
0x171e   : > { %v1532_v53 = vmul.f32 %v1528_v40, %v3053_v58  ;;  %v1529_v36 = vmul.f32 %v1528_v40, %v3064_v56  ;;  %p1696_p7 = scmp.lt.s32.totalorder %s1695_s20, 12 }
0x1720   : > { %v3134_v1 = vadd.f32 %v1532_v53, %v1531_v3  ;;  %s1697_s30 = scalar_select %p1696_p7, 1, 0 }
0x1721   : > { %v1449_v19 = vpop.permute.xlu0 %1448 }
0x1722   : > { %s1698_s28 = scvt.s32.f32 %s1697_s30 }
0x1724   : > { %s1701_s18 = ssub.f32 1.0, %s1698_s28 }
0x1725   : > { %v1543_v48 = vpop.permute.xlu0 %1542 }
0x178b   : > { %v1456_v18 = vpop.permute.xlu1 %1455 }
0x178c   : > { %2205 = vmatmul.mubr.msk.bf16.vlgmr.msra.gmra.mxu0 %vm579_vm7, %v1456_v18 }
0x178d   : > { %1566 = vmatpush1.bf16.msra.mxu0 %v2695_v10  ;;  %1587 = vmatprep.mubr.bf16.mxu0 %v2525_v13 }
0x178e   : > { %1567 = vmatprep.subr.bf16.mxu0 %v3105_v45 }
0x1791   : > { %1568 = vmatpush1.bf16.msra.mxu0 %v3111_v12 }
0x1792   : > { %1569 = vmatprep.subr.bf16.mxu0 %v3117_v29 }
0x1795   : > { %1570 = vmatpush1.bf16.msra.mxu0 %v3123_v37 }
0x1796   : > { %2216 = vmatprep.subr.bf16.mxu0 %v2528_v47 }
0x184c   : > { %v1494_v2 = vpop.f32.mrf.mxu0 }
0x184d   : > { %v1495_v5 = vadd.f32 %v2809_v59, %v1494_v2  ;;  %v1418_v59 = vadd.f32 %v3080_v7, %v2817_v6 }
0x184e   : > { %v2206_v15 = vpop.f32.mrf.mxu0 }
0x184f   : > { %v2107_v61 = vmul.f32 -1.442695, %v1495_v5  ;;  %1509 = vrot.lane.b32.xlu1 %v1495_v5, %s2531_s25  ;;  %v1451_v28 = vmul.f32 %v1449_v19, %v1418_v59  ;;  %v1534_v5 = vmul.f32 %v1525_v42, %v3089_v11  ;;  %v1535_v15 = vmul.f32 %v1528_v40, %v3086_v38  ;;  %v2117_v40 = vld [vmem:[%s2656_s12 + $0x1c] sm:$0xf]  ;;  %s3409_s12 = smov 74  }
0x1850   : > { %v1497_v0 = vpop.f32.mrf.mxu0  ;;  %v1699_v59 = vstv %s1698_s28 }
0x1851   : > { %2372 = vpow2.f32 %v2107_v61  ;;  %v1452_v8 = vadd.f32 %v1451_v28, %v3064_v56  ;;  %v2406_v56 = vld [vmem:[%s3388_s6] sm:$0xff]   ;;  %v3167_v61 = vadd.f32 %v1535_v15, %v1534_v5 }
0x1852   : > { %v2207_v21 = vpop.f32.mrf.mxu0 }
0x1853   : > { %1546 = vrot.lane.b32.xlu1 %v3134_v1, %s3401_s11  ;;  %s1869_s11 = sadd.s32 7, %s2647_s26  ;;  %s2533_s26 = smov 96  }
0x1854   : > { %p1870_p8 = scmp.lt.s32.totalorder %s1869_s11, 12 }
0x1856   : > { %s1871_s20 = scalar_select %p1870_p8, 1, 0 }
0x1858   : > { %s1872_s30 = scvt.s32.f32 %s1871_s20 }
0x185e   : > { %v2373_v23 = vpop.eup %2372 }
0x185f   : > { %v1503_v24 = vadd.f32 1.0, %v2373_v23 }
0x1861   : > { %2374 = vrcp.f32 %v1503_v24  ;;  %v2110_v24 = vld [vmem:[%s2661_s21 + $0x18] sm:$0xf] }
0x186e   : > { %v2375_v63 = vpop.eup %2374 }
0x186f   : > { %v1506_v58 = vsub.f32 1.0, %v2375_v63 }
0x1871   : > { %v1507_v17 = vmul.f32 %v1506_v58, %v1452_v8 }
0x18c1   : > { %v1510_v26 = vpop.permute.xlu1 %1509 }
0x18c2   : > { %v1512_v46 = vmul.f32 %v2375_v63, %v1510_v26 }
0x18c4   : > { %v3141_v32 = vadd.f32 %v1512_v46, %v1507_v17 }
0x18c5   : > { %v1547_v39 = vpop.permute.xlu1 %1546 }
0x18c6   : > { %v1526_v16 = vmul.f32 %v1525_v42, %v3141_v32 }
0x18c8   : > { %v3145_v35 = vadd.f32 %v1529_v36, %v1526_v16 }
0x18ca   : > { %v1549_v7 = vsel %vm426_vm3, %v3145_v35, %v1543_v48 }
0x18cb   : > { %v1550_v30 = vsel %vm428_vm4, %v1549_v7, %v1547_v39 }
0x18cc   : > { %v1551_v44 = vpack.c.bf16 %v1550_v30, %v1550_v30 }
0x18ce   : > { %2112 = vmatmul.mubr.msk.bf16.vlgmr.msra.gmra.mxu0 %vm470_vm5, %v1551_v44 }
0x18cf   : > { %2217 = vmatpush3.bf16.msra.mxu0 %v2405_v20  ;;  %2220 = vmatprep.mubr.msk.bf16.mxu0 %vm2529_vm6, %v2528_v47 }
0x18d0   : > { %2218 = vmatprep.subr.bf16.mxu0 %v2528_v47 }
0x18d3   : > { %2219 = vmatpush3.bf16.msra.mxu0 %v2406_v56 }
0x198e   : > { %v1589_v31 = vpop.f32.mrf.mxu0 }
0x198f   : > { %v1590_v49 = vadd.f32 %v1589_v31, %v2735_v25 }
0x1990   : > { %v3161_v9 = vpop.f32.mrf.mxu0 }
0x1991   : > { %2376 = vtanh.f32 %v1590_v49  ;;  %v2113_v34 = vmul.f32 -1.442695, %v1590_v49  ;;  %v1592_v36 = vadd.f32 %v3161_v9, %v2817_v6 }
0x1992   : > { %v1593_v54 = vpop.f32.mrf.mxu0 }
0x1993   : > { %2378 = vpow2.f32 %v2113_v34 }
0x1994   : > { %v1594_v43 = vpop.f32.mrf.mxu0 }
0x199e   : > { %v2377_v14 = vpop.eup %2376 }
0x199f   : > { %1605 = vrot.lane.b32.xlu0 %v2377_v14, %s3407_s27 }
0x19a0   : > { %v2379_v18 = vpop.eup %2378 }
0x19a1   : > { %v1599_v47 = vadd.f32 1.0, %v2379_v18 }
0x19a3   : > { %2380 = vrcp.f32 %v1599_v47 }
0x19b0   : > { %v2381_v60 = vpop.eup %2380 }
0x19b1   : > { %v1603_v53 = vmul.f32 %v2381_v60, %v3167_v61 }
0x1a11   : > { %v1606_v2 = vpop.permute.xlu0 %1605 }
0x1a12   : > { %v1608_v3 = vmul.f32 %v2381_v60, %v1606_v2 }
0x1a14   : > { %1610 = vrot.lane.b32.xlu1 %v1608_v3, %s3407_s27 }
0x1a86   : > { %v1611_v0 = vpop.permute.xlu1 %1610 }
0x1a87   : > { %v3170_v21 = vadd.f32 %v1611_v0, %v1603_v53 }
0x1a89   : > { %2382 = vtanh.f32 %v3170_v21 }
0x1a96   : > { %v2383_v23 = vpop.eup %2382 }
0x1a97   : > { %1616 = vrot.lane.b32.xlu0 %v2383_v23, %s3407_s27 }
0x1a9b   : > { %1622 = vperm.xlu0 %2292, %v2110_v24  }
0x1a9f   : > { %1716 = vrot.lane.b32.xlu0 %v2117_v40, %s2523_s15  ;;  %s2532_s15 = smov 66  }
0x1b09   : > { %v1617_v19 = vpop.permute.xlu0 %1616 }
0x1b0a   : > { %v3175_v11 = vmul.f32 %v2381_v60, %v1617_v19 }
0x1b0c   : > { %v1627_v38 = vpack.c.bf16 %v3175_v11, %v3175_v11 }
0x1b0e   : > { %1629 = vrot.lane.b32.xlu1 %v1627_v38, %s3408_s29 }
0x1b16   : > { %v1623_v16 = vpop.permute.xlu0 %1622 }
0x1b17   : > { %v1625_v48 = vmul.f32 %v1623_v16, %v1592_v36 }
0x1b19   : > { %v1626_v7 = vadd.f32 %v1625_v48, %v3145_v35 }
0x1b1a   : > { %v1717_v54 = vpop.permute.xlu0 %1716 }
0x1b80   : > { %v1630_v42 = vpop.permute.xlu1 %1629 }
0x1b81   : > { %2213 = vmatmul.mubr.msk.bf16.vlgmr.msra.gmra.mxu1 %vm579_vm7, %v1630_v42 }
0x1b82   : > { %1740 = vmatpush1.bf16.msra.mxu1 %v2695_v10  ;;  %1761 = vmatprep.mubr.bf16.mxu1 %v2525_v13  ;;  %v1705_v13 = vmul.f32 %v1699_v59, %v3175_v11 }
0x1b83   : > { %1741 = vmatprep.subr.bf16.mxu1 %v3105_v45  ;;  %v3194_v45 = vld [vmem:[%s3389_s7] ss:$0 sm:$0xff] }
0x1b86   : > { %1742 = vmatpush1.bf16.msra.mxu1 %v3111_v12 }
0x1b87   : > { %1743 = vmatprep.subr.bf16.mxu1 %v3117_v29 }
0x1b8a   : > { %1744 = vmatpush1.bf16.msra.mxu1 %v3123_v37  ;;  %v1702_v37 = vstv %s1701_s18 }
0x1b8b   : > { %v1706_v63 = vmul.f32 %v1702_v37, %v3134_v1  ;;  %v1703_v49 = vmul.f32 %v1702_v37, %v3145_v35  ;;  %v1709_v38 = vmul.f32 %v1702_v37, %v3167_v61 }
0x1b8d   : > { %v3199_v58 = vadd.f32 %v1706_v63, %v1705_v13 }
0x1c41   : > { %v1668_v10 = vpop.f32.mrf.mxu1 }
0x1c42   : > { %v1669_v12 = vadd.f32 %v3194_v45, %v1668_v10 }
0x1c43   : > { %v2214_v29 = vpop.f32.mrf.mxu1 }
0x1c44   : > { %v2115_v28 = vmul.f32 -1.442695, %v1669_v12  ;;  %1683 = vrot.lane.b32.xlu1 %v1669_v12, %s2531_s25  ;;  %v2118_v29 = vld [vmem:[%s2661_s21 + $0x1c] sm:$0xf]  ;;  %s2534_s21 = smov (!%p2125_p9), 66  }
0x1c45   : > { %v1671_v8 = vpop.f32.mrf.mxu1 }
0x1c46   : > { %2384 = vpow2.f32 %v2115_v28 }
0x1c47   : > { %v2215_v17 = vpop.f32.mrf.mxu1 }
0x1c48   : > { %1720 = vrot.lane.b32.xlu1 %v3199_v58, %s3409_s12 }
0x1c53   : > { %v2385_v26 = vpop.eup %2384 }
0x1c54   : > { %v1677_v46 = vadd.f32 1.0, %v2385_v26 }
0x1c56   : > { %2386 = vrcp.f32 %v1677_v46 }
0x1c63   : > { %v2387_v39 = vpop.eup %2386 }
0x1c64   : > { %v1680_v1 = vsub.f32 1.0, %v2387_v39 }
0x1c66   : > { %v1681_v30 = vmul.f32 %v1680_v1, %v1626_v7 }
0x1cb6   : > { %v1684_v44 = vpop.permute.xlu1 %1683 }
0x1cb7   : > { %v1686_v20 = vmul.f32 %v2387_v39, %v1684_v44 }
0x1cb9   : > { %v3206_v56 = vadd.f32 %v1686_v20, %v1681_v30 }
0x1cba   : > { %v1721_v14 = vpop.permute.xlu1 %1720 }
0x1cbb   : > { %v1700_v31 = vmul.f32 %v1699_v59, %v3206_v56 }
0x1cbd   : > { %v3210_v43 = vadd.f32 %v1703_v49, %v1700_v31 }
0x1cbf   : > { %v1723_v9 = vsel %vm426_vm3, %v3210_v43, %v1717_v54 }
0x1cc0   : > { %v1724_v34 = vsel %vm428_vm4, %v1723_v9, %v1721_v14 }
0x1cc1   : > { %v1725_v18 = vpack.c.bf16 %v1724_v34, %v1724_v34 }
0x1cc3   : > { %2120 = vmatmul.mubr.msk.bf16.vlgmr.msra.gmra.mxu1 %vm470_vm5, %v1725_v18 }
0x1d83   : > { %v1763_v47 = vpop.f32.mrf.mxu1 }
0x1d84   : > { %v1764_v60 = vadd.f32 %v1763_v47, %v2735_v25  ;;  %v1708_v25 = vmul.f32 %v1699_v59, %v3170_v21  ;;  %v3238_v59 = vstv %s1872_s30 }
0x1d85   : > { %v1765_v2 = vpop.f32.mrf.mxu1 }
0x1d86   : > { %2388 = vtanh.f32 %v1764_v60  ;;  %v2121_v15 = vmul.f32 -1.442695, %v1764_v60  ;;  %v3221_v42 = vadd.f32 %v1709_v38, %v1708_v25  ;;  %v1766_v28 = vadd.f32 %v1765_v2, %v2817_v6 }
0x1d87   : > { %v1767_v3 = vpop.f32.mrf.mxu1 }
0x1d88   : > { %2390 = vpow2.f32 %v2121_v15 }
0x1d89   : > { %v1768_v5 = vpop.f32.mrf.mxu1 }
0x1d93   : > { %v2389_v35 = vpop.eup %2388 }
0x1d94   : > { %1779 = vrot.lane.b32.xlu0 %v2389_v35, %s3407_s27 }
0x1d95   : > { %v2391_v53 = vpop.eup %2390 }
0x1d96   : > { %v1773_v0 = vadd.f32 1.0, %v2391_v53 }
0x1d98   : > { %2392 = vrcp.f32 %v1773_v0 }
0x1da5   : > { %v2393_v23 = vpop.eup %2392 }
0x1da6   : > { %v1777_v40 = vmul.f32 %v2393_v23, %v3221_v42 }
0x1e06   : > { %v1780_v24 = vpop.permute.xlu0 %1779 }
0x1e07   : > { %v1782_v19 = vmul.f32 %v2393_v23, %v1780_v24 }
0x1e09   : > { %1784 = vrot.lane.b32.xlu1 %v1782_v19, %s3407_s27 }
0x1e7b   : > { %v1785_v10 = vpop.permute.xlu1 %1784 }
0x1e7c   : > { %v3224_v13 = vadd.f32 %v1785_v10, %v1777_v40 }
0x1e7e   : > { %2394 = vtanh.f32 %v3224_v13 }
0x1e8b   : > { %v2395_v12 = vpop.eup %2394 }
0x1e8c   : > { %1790 = vrot.lane.b32.xlu0 %v2395_v12, %s3407_s27  ;;  %s1875_s27 = ssub.f32 1.0, %s1872_s30 }
0x1e8e   : > { %v3240_v37 = vstv %s1875_s27 }
0x1e8f   : > { %v1877_v3 = vmul.f32 %v3240_v37, %v3210_v43 }
0x1e90   : > { %1796 = vperm.xlu0 %2292, %v2118_v29  }
0x1e94   : > { %638 = vrot.lane.b32.xlu0 %v2782_v50, %s2532_s15 }
0x1e98   : > { %993 = vrot.lane.b32.xlu0 %v2915_v57, %s2532_s15 }
0x1e9c   : > { %1341 = vrot.lane.b32.xlu0 %v3033_v22, %s2532_s15  ;;  %v1880_v22 = vmul.f32 %v3240_v37, %v3199_v58 }
0x1ea0   : > { %1689 = vrot.lane.b32.xlu0 %v3175_v11, %s2532_s15 }
0x1efe   : > { %v1791_v61 = vpop.permute.xlu0 %1790 }
0x1eff   : > { %v1793_v21 = vmul.f32 %v2393_v23, %v1791_v61 }
0x1f01   : > { %v1879_v50 = vmul.f32 %v3238_v59, %v1793_v21  ;;  %v1801_v57 = vpack.c.bf16 %v1793_v21, %v1793_v21 }
0x1f03   : > { %1803 = vrot.lane.b32.xlu1 %v1801_v57, %s3408_s29  ;;  %v3246_v11 = vadd.f32 %v1880_v22, %v1879_v50 }
0x1f05   : > { %1888 = vrot.lane.b32.xlu0 %v3246_v11, %s3408_s29 }
0x1f07   : > { %819 = vrot.lane.b32.xlu1 %v2856_v62, %s2532_s15 }
0x1f0b   : > { %1167 = vrot.lane.b32.xlu1 %v2974_v4, %s2532_s15  ;;  %v1797_v63 = vpop.permute.xlu0 %1796 }
0x1f0c   : > { %v1799_v8 = vmul.f32 %v1797_v63, %v1766_v28 }
0x1f0e   : > { %v1800_v14 = vadd.f32 %v1799_v8, %v3210_v43 }
0x1f0f   : > { %1515 = vrot.lane.b32.xlu1 %v3094_v55, %s2532_s15  ;;  %v639_v58 = vpop.permute.xlu0 %638 }
0x1f10   : > { %v641_v17 = vsel %vm426_vm3, %v2822_v27, %v639_v58 }
0x1f11   : > { %643 = vst.msk [vmem:[%s2663_s22] sm:$0xf] %vm642_vm8, %v641_v17 }
0x1f13   : > { %v994_v26 = vpop.permute.xlu0 %993 }
0x1f14   : > { %v996_v6 = vsel %vm426_vm3, %v2942_v41, %v994_v26 }
0x1f15   : > { %2084 = vst.msk [vmem:[%s2663_s22 + $0x8] sm:$0xf] %vm642_vm8, %v996_v6 }
0x1f17   : > { %v1342_v62 = vpop.permute.xlu0 %1341 }
0x1f18   : > { %v1344_v4 = vsel %vm426_vm3, %v3060_v51, %v1342_v62 }
0x1f19   : > { %2100 = vst.msk [vmem:[%s2663_s22 + $0x10] sm:$0xf] %vm642_vm8, %v1344_v4 }
0x1f1b   : > { %v1690_v55 = vpop.permute.xlu0 %1689 }
0x1f1c   : > { %v1692_v27 = vsel %vm426_vm3, %v3206_v56, %v1690_v55  ;;  %v1882_v56 = vmul.f32 %v3238_v59, %v3224_v13 }
0x1f1d   : > { %2116 = vst.msk [vmem:[%s2663_s22 + $0x18] sm:$0xf] %vm642_vm8, %v1692_v27 }
0x1f75   : > { %v1804_v46 = vpop.permute.xlu1 %1803 }
0x1f76   : > { %2221 = vmatmul.mubr.msk.bf16.vlgmr.msra.gmra.mxu0 %vm579_vm7, %v1804_v46 }
0x1f77   : > { %v1889_v41 = vpop.permute.xlu0 %1888 }
0x1f78   : > { %1892 = vst.msk [vmem:[#allocation2] sm:$0xf] %vm1891_vm9, %v1889_v41 }
0x1f79   : > { %v820_v16 = vpop.permute.xlu1 %819 }
0x1f7a   : > { %v822_v51 = vsel %vm426_vm3, %v2883_v33, %v820_v16 }
0x1f7b   : > { %2076 = vst.msk [vmem:[%s2663_s22 + $0x4] sm:$0xf] %vm642_vm8, %v822_v51 }
0x1f7d   : > { %v1168_v36 = vpop.permute.xlu1 %1167 }
0x1f7e   : > { %v1170_v48 = vsel %vm426_vm3, %v3001_v52, %v1168_v36 }
0x1f7f   : > { %2092 = vst.msk [vmem:[%s2663_s22 + $0xc] sm:$0xf] %vm642_vm8, %v1170_v48 }
0x1f81   : > { %v1516_v39 = vpop.permute.xlu1 %1515 }
0x1f82   : > { %v1518_v7 = vsel %vm426_vm3, %v3141_v32, %v1516_v39  ;;  %v1883_v32 = vmul.f32 %v3240_v37, %v3221_v42 }
0x1f83   : > { %2108 = vst.msk [vmem:[%s2663_s22 + $0x14] sm:$0xf] %vm642_vm8, %v1518_v7 }
0x1f84   : > { %v1884_v31 = vadd.f32 %v1883_v32, %v1882_v56 }
0x2036   : > { %v1842_v1 = vpop.f32.mrf.mxu0 }
0x2037   : > { %v1843_v30 = vadd.f32 %v3194_v45, %v1842_v1 }
0x2038   : > { %v2222_v44 = vpop.f32.mrf.mxu0 }
0x2039   : > { %v2123_v20 = vmul.f32 -1.442695, %v1843_v30  ;;  %1857 = vrot.lane.b32.xlu1 %v1843_v30, %s2531_s25  ;;  %s2535_s25 = smov (!%p2125_p9), 98  }
0x203a   : > { %v1845_v33 = vpop.f32.mrf.mxu0 }
0x203b   : > { %2396 = vpow2.f32 %v2123_v20 }
0x203c   : > { %v2223_v52 = vpop.f32.mrf.mxu0 }
0x203d   : > { %1863 = vrot.lane.b32.xlu1 %v1793_v21, %s2532_s15 }
0x2041   : > { %1894 = vrot.lane.b32.xlu1 %v1884_v31, %s2533_s26 }
0x2048   : > { %v2397_v45 = vpop.eup %2396 }
0x2049   : > { %v1851_v49 = vadd.f32 1.0, %v2397_v45 }
0x204b   : > { %2398 = vrcp.f32 %v1851_v49 }
0x2058   : > { %v2399_v54 = vpop.eup %2398 }
0x2059   : > { %v1854_v9 = vsub.f32 1.0, %v2399_v54 }
0x205b   : > { %v1855_v34 = vmul.f32 %v1854_v9, %v1800_v14 }
0x20ab   : > { %v1858_v18 = vpop.permute.xlu1 %1857 }
0x20ac   : > { %v1860_v47 = vmul.f32 %v2399_v54, %v1858_v18 }
0x20ae   : > { %v1861_v60 = vadd.f32 %v1860_v47, %v1855_v34 }
0x20af   : > { %v1864_v2 = vpop.permute.xlu1 %1863 }
0x20b0   : > { %v1874_v5 = vmul.f32 %v3238_v59, %v1861_v60  ;;  %v1866_v35 = vsel %vm426_vm3, %v1861_v60, %v1864_v2 }
0x20b1   : > { %2124 = vst.msk [vmem:[%s2663_s22 + $0x1c] sm:$0xf] %vm642_vm8, %v1866_v35  ;;  %1901 = sbr.rel (%p2125_p9) target bundleno = 8495 (0x212f), region = 60 }
0x20b2   : > { %v1878_v15 = vadd.f32 %v1877_v3, %v1874_v5 }
0x20b3   : > { %v1895_v53 = vpop.permute.xlu1 %1894 }
0x20b4   : > { %1886 = vst.msk [vmem:[#allocation4] sm:$0xf] %vm1885_vm10, %v1878_v15 }
0x20b5   : > { %1897 = vst.msk [vmem:[#allocation3] sm:$0xf] %vm1891_vm9, %v1895_v53 }
0x20b6   : > { %1902 = vrot.lane.b32.xlu0 %v3246_v11, %s2534_s21  ;;  %v1907_v23 = vld [vmem:[%s3385_s3] sm:$0xf] }
0x20ba   : > { %1908 = vrot.lane.b32.xlu0 %v1884_v31, %s2535_s25 }
0x2128   : > { %v1903_v43 = vpop.permute.xlu0 %1902 }
0x2129   : > { %v1905_v0 = vsel %vm426_vm3, %v1878_v15, %v1903_v43 }
0x212a   : > { %1906 = vst.msk [vmem:[#allocation7] sm:$0xf] %vm642_vm8, %v1905_v0 }
0x212c   : > { %v1909_v24 = vpop.permute.xlu0 %1908 }
0x212d   : > { %v1911_v19 = vsel %vm426_vm3, %v1907_v23, %v1909_v24 }
0x212e   : > { %1912 = vst.msk [vmem:[#allocation9] sm:$0xf] %vm642_vm8, %v1911_v19 }
0x212f PF: > { %s2536_s18 = smov [#allocation7]   ;;  %s2135_s12 = sshll.u32 %s2616_s17, 9 }
0x2130   : > { %s1941_s19 = sshll.u32 %s2536_s18, 4  ;;  %s3315_s20 = scalar_lea.hbm %s3390_s8, %s2135_s12  ;;  %s1942_s19 = int_to_ptr.vmem [resolvable:$true] %s1941_s19 }
0x2131   : > { %s2408_s30 = scalar_lea.vmem %s1942_s19, 64  ;;  %p2415_p13 = scmp.lt.s32.totalorder %s1942_s19, %s1942_s19 }
0x2132   : > { %p2409_p10 = scmp.ne.s32.totalorder %s1942_s19, %s2408_s30  ;;  %p2416_p0 = scmp.lt.s32.totalorder %s2408_s30, %s2408_s30 }
0x2134   : > { %p2410_p11 = pnand %p2409_p10, %p221_p2  ;;  %p2417_p1 = por %p2416_p0, %p2415_p13 }
0x2136   : > { %p2411_p12 = pneg %p2410_p11 }
0x2138   : > { %p2418_p3 = pnand %p2417_p1, %p2411_p12 }
0x213a   : > { %2421 = shalt.err (!%p2418_p3)
}
0x213b   : > { %2226 = dma.vmem_to_hbm [thread:$0]  (%p221_p2), %s1942_s19, 64, %s3391_s9, [#allocation8]  }
0x213c   : > { %s1927_s21 = sshll.u32 %s2663_s22, 4  ;;  %s3410_s25 = sand.u32 1, %s2512_s14   ;;  %s3325_s21 = int_to_ptr.vmem [resolvable:$true] %s1927_s21 }
0x213d   : > { %s3329_s29 = scalar_lea.sflag [#allocation6], %s3410_s25  ;;  %s2432_s28 = scalar_lea.vmem %s3325_s21, 512 }
0x213e   : > { %p2433_p4 = scmp.ne.s32.totalorder %s3325_s21, %s2432_s28  ;;  %s2537_s18 = smov [#allocation5]  }
0x213f   : > { %s2436_s12 = sshll.u32 %s2537_s18, 4  ;;  %s2437_s12 = int_to_ptr.vmem [resolvable:$false] %s2436_s12 }
0x2140   : > { %p2434_p7 = pnand %p2433_p4, %p2635_p5  ;;  %s2438_s15 = scalar_lea.vmem %s2437_s12, 1024 }
0x2141   : > { %p2439_p9 = scmp.lt.s32.totalorder %s3325_s21, %s2437_s12  ;;  %p2440_p10 = scmp.lt.s32.totalorder %s2438_s15, %s2432_s28 }
0x2142   : > { %p2435_p8 = pneg %p2434_p7 }
0x2143   : > { %p2441_p11 = por %p2440_p10, %p2439_p9 }
0x2145   : > { %p2442_p12 = pnand %p2441_p11, %p2435_p8 }
0x2147   : > { %2445 = shalt.err (!%p2442_p12)
}
0x2148   : > { %s2446_s22 = scalar_lea.hbm %s3315_s20, 512  ;;  %s2450_s30 = scalar_lea.hbm %s3390_s8, 1024 }
0x2149   : > { %p2447_p13 = scmp.ne.s32.totalorder %s3315_s20, %s2446_s22  ;;  %p2451_p3 = scmp.lt.s32.totalorder %s3315_s20, %s3390_s8 }
0x214a   : > { %p2452_p4 = scmp.lt.s32.totalorder %s2450_s30, %s2446_s22 }
0x214b   : > { %p2448_p0 = pnand %p2447_p13, %p2635_p5 }
0x214c   : > { %p2453_p7 = por %p2452_p4, %p2451_p3 }
0x214d   : > { %p2449_p1 = pneg %p2448_p0 }
0x214f   : > { %p2454_p8 = pnand %p2453_p7, %p2449_p1 }
0x2151   : > { %2457 = shalt.err (!%p2454_p8)
}
0x2152   : > { %s2538_s25 = smov 4   ;;  %s3411_s28 = smov 64  }
0x2153   : > { %2224 = dma.vmem_to_hbm [thread:$0]  (%p2635_p5), %s3325_s21, 512, %s3315_s20, %s3329_s29, %s3411_s28, %s3411_s28, %s2538_s25  }
0x2154   : > { %s2539_s18 = smov [#allocation9]  }
0x2155   : > { %s1952_s12 = sshll.u32 %s2539_s18, 4  ;;  %s1953_s12 = int_to_ptr.vmem [resolvable:$true] %s1952_s12 }
0x2156   : > { %s2458_s15 = scalar_lea.vmem %s1953_s12, 64  ;;  %p2465_p12 = scmp.lt.s32.totalorder %s1953_s12, %s1953_s12 }
0x2157   : > { %p2459_p9 = scmp.ne.s32.totalorder %s1953_s12, %s2458_s15  ;;  %p2466_p13 = scmp.lt.s32.totalorder %s2458_s15, %s2458_s15 }
0x2159   : > { %p2460_p10 = pnand %p2459_p9, %p221_p2  ;;  %p2467_p0 = por %p2466_p13, %p2465_p12 }
0x215b   : > { %p2461_p11 = pneg %p2460_p10 }
0x215d   : > { %p2468_p1 = pnand %p2467_p0, %p2461_p11 }
0x215f   : > { %2471 = shalt.err (!%p2468_p1)
}
0x2160   : > { %2228 = dma.vmem_to_hbm [thread:$0]  (%p221_p2), %s1953_s12, 64, %s3392_s10, [#allocation8]  }
0x2161   : > { %2499 = dma.done.wait (%p221_p2), [#allocation8], 128  }
0x2162   : > { %2501 = vsyncadd (%p221_p2), [#allocation8], 4294967168 }
0x2163 PF: > { %p2242_p5 = scmp.ge.s32.totalorder %s2520_s16, 2  ;;  %s1972_s20 = sand.u32 1, %s2508_s13  }
0x2164   : > { %s1973_s21 = scalar_lea.sflag [#allocation6], %s1972_s20 }
0x2165   : > { %p2235_p3 = pnand %p2242_p5, %p2639_p6 }
0x2167   : > { %p2236_p4 = pneg %p2235_p3 }
0x2169   : > { %2503 = dma.done.wait (%p2236_p4), %s1973_s21, 512  }
0x216a   : > { %2505 = vsyncadd (%p2236_p4), %s1973_s21, 4294966784  ;;  %s3412_s16 = sld [smem:[#allocation13_spill]]  ;;  %s3415_s13 = smov %s2512_s14 }
0x216b   : > { %s3413_s29 = sld [smem:[#allocation12_spill]] }
0x216c   : > { %s3414_s15 = sld [smem:[#allocation14_spill]] }
0x2170   : > { %p22_p7 = scmp.ge.s32.totalorder %s3412_s16, 4  }
0x2171   : > { %s3416_s14 = smov %s3413_s29 }
0x2172   :  { %24 = sbr.rel (!%p22_p7) target bundleno = 4 (0x4), region = 135 }
0x2177   :  { %1978 = vsyncpa [#allocation6], 1 }
0x2178   :  { %1980 = vsyncpa [#allocation6 + $0x1], 1 }
0x2179   :  { %1981 = vsyncpa [#allocation8], 1 }

</bundles_post_ra>
